<compile_context>
chip_gen: v5e
topology: v5e:2x2
jax: 0.10.0
libtpu: 0.0.40
codegen_flags: <defaults>
</compile_context>

<pallas_src>
import functools

import jax
import jax.numpy as jnp
import numpy as np
from jax.experimental import pallas as pl
from jax.experimental.pallas import tpu as pltpu


def _round_up(x, m):
    return (x + m - 1) // m * m


# ----------------------------------------------------------------------------
# Fused Pallas kernel: conv (all filter sizes, all taps) + bias + ReLU +
# max-pool over time + fc epilogue
# ----------------------------------------------------------------------------
def fused_textcnn_kernel(x_ref, w_ref, b_ref, mask_ref, fcw_ref, fcb_ref, o_ref,
                         *, max_k, F_pad, Lmax):
    """One batch tile of the whole CNN head.

    x_ref    : (Bt, S_pad, H_pad)        bf16 zero-padded encoder activations
    w_ref    : (H_pad, max_k * F_pad)    bf16 combined-tap conv weights
    b_ref    : (1, F_pad)                f32 packed conv biases
    mask_ref : (Lmax, F_pad)             f32 time-step validity per column
    fcw_ref  : (F_pad, C_pad)            bf16 fc weight (transposed, padded)
    fcb_ref  : (1, C_pad)                f32 fc bias (padded)
    o_ref    : (Bt, C_pad)               f32 logits (lane-dense padded)
    """
    Bt, S_pad, H = x_ref.shape

    # Single wide MXU matmul: every tap of every filter bank along N.
    # H is lane-padded so this reshape is a free relayout (no copy).
    x_flat = x_ref[...].reshape(Bt * S_pad, H)
    y = jnp.dot(x_flat, w_ref[...], preferred_element_type=jnp.float32)
    y = y.reshape(Bt, S_pad, max_k * F_pad)

    # Shifted combine of the taps on the SMALL result (never on the wide
    # activation).  Tap 0 seeds the accumulator, bias is folded in here.
    conv = y[:, 0:Lmax, 0:F_pad] + b_ref[...][:, None, :]
    for i in range(1, max_k):                                  # small, static
        conv = conv + y[:, i:i + Lmax, i * F_pad:(i + 1) * F_pad]

    act = jnp.maximum(conv, 0.0)                               # ReLU (f32)
    act = act * mask_ref[...][None, :, :]                      # drop invalid t per bank
    pooled = jnp.max(act, axis=1)                              # (Bt, F_pad)

    out = jnp.dot(pooled.astype(fcw_ref.dtype), fcw_ref[...],
                  preferred_element_type=jnp.float32)
    o_ref[...] = out + fcb_ref[...]


# ----------------------------------------------------------------------------
# Wrapper: pad / tile / pallas_call
# ----------------------------------------------------------------------------
@functools.partial(jax.jit,
                   static_argnames=("batch_tile", "seq_pad", "num_classes",
                                    "single_buffer_consts"))
def fused_textcnn(x, w_wide, b_packed, mask, fc_w_pad, fc_b_pad, *,
                  batch_tile, seq_pad, num_classes, single_buffer_consts=True):
    B, S, H_pad = x.shape
    B_pad = _round_up(B, batch_tile)
    x_p = jnp.pad(x, ((0, B_pad - B), (0, seq_pad - S), (0, 0)))

    Lmax, F_pad = mask.shape
    max_k = w_wide.shape[1] // F_pad
    C_pad = fc_w_pad.shape[1]

    isz = lambda a: np.dtype(a.dtype).itemsize

    # ---- advisory cost estimate for XLA's scheduler ----
    flops = (2 * B_pad * seq_pad * H_pad * (max_k * F_pad)
             + 2 * B_pad * F_pad * C_pad)
    bytes_accessed = (B_pad * seq_pad * H_pad * isz(x_p)
                      + w_wide.size * isz(w_wide)
                      + b_packed.size * 4 + mask.size * 4
                      + fc_w_pad.size * isz(fc_w_pad) + fc_b_pad.size * 4
                      + B_pad * C_pad * 4)

    # ---- explicit VMEM budget (v7x only has 64 MiB physical / TC) ----
    x_tile = batch_tile * seq_pad * H_pad * isz(x_p)
    consts = (w_wide.size * isz(w_wide) + fc_w_pad.size * isz(fc_w_pad)
              + (b_packed.size + mask.size + fc_b_pad.size) * 4)
    interm = (batch_tile * seq_pad * max_k * F_pad * 4        # wide matmul result
              + batch_tile * Lmax * F_pad * 4)                # conv accumulator
    out_tile = batch_tile * C_pad * 4
    const_bufs = 1 if single_buffer_consts else 2
    need = 2 * x_tile + const_bufs * consts + interm + 2 * out_tile
    vmem_limit = int(min(max(2 * need, 32 * 1024 * 1024), 64 * 1024 * 1024))

    def _const(shape):
        # Grid-invariant operand: DMA'd once; single-buffer it to free VMEM.
        idx = lambda b: (0,) * len(shape)
        if single_buffer_consts:
            return pl.BlockSpec(shape, idx, pipeline_mode=pl.Buffered(1))
        return pl.BlockSpec(shape, idx)

    kernel = functools.partial(fused_textcnn_kernel,
                               max_k=max_k, F_pad=F_pad, Lmax=Lmax)

    out = pl.pallas_call(
        kernel,
        out_shape=jax.ShapeDtypeStruct((B_pad, C_pad), jnp.float32),
        grid_spec=pltpu.PrefetchScalarGridSpec(
            num_scalar_prefetch=0,
            grid=(B_pad // batch_tile,),
            in_specs=[
                pl.BlockSpec((batch_tile, seq_pad, H_pad), lambda b: (b, 0, 0)),
                _const((H_pad, max_k * F_pad)),
                _const((1, F_pad)),
                _const((Lmax, F_pad)),
                _const((F_pad, C_pad)),
                _const((1, C_pad)),
            ],
            out_specs=pl.BlockSpec((batch_tile, C_pad), lambda b: (b, 0)),
        ),
        compiler_params=pltpu.CompilerParams(
            dimension_semantics=("parallel",),
            vmem_limit_bytes=vmem_limit),
        cost_estimate=pl.CostEstimate(flops=int(flops), transcendentals=0,
                                      bytes_accessed=int(bytes_accessed)),
    )(x_p, w_wide, b_packed, mask, fc_w_pad, fc_b_pad)
    return out[:B, :num_classes]


# ----------------------------------------------------------------------------
# One-time host-side packing of the PyTorch-layout parameters
# ----------------------------------------------------------------------------
def pack_params(conv_params, fc_w, fc_b, seq_len, *, lane=128, sublane=8,
                compute_dtype=jnp.bfloat16):
    """Pack per-filter-size conv weights + fc into lane-dense padded arrays."""
    filter_sizes = [int(w.shape[0]) for (w, _) in conv_params]
    if seq_len < max(filter_sizes):
        raise ValueError("seq_len must be >= max(filter_sizes)")
    H = int(conv_params[0][0].shape[1])
    F = int(conv_params[0][0].shape[2])
    F_total = len(conv_params) * F
    F_pad = _round_up(F_total, lane)
    H_pad = _round_up(H, lane)
    max_k, min_k = max(filter_sizes), min(filter_sizes)

    Lmax = _round_up(seq_len - min_k + 1, sublane)       # padded pool length
    seq_pad = _round_up(Lmax + max_k - 1, sublane)       # padded activation length

    # Combined-tap RHS: one (H_pad, max_k*F_pad) matrix so the conv is a single
    # MXU matmul per batch tile.  Tap i of bank j lives in lane block i at
    # columns [i*F_pad + j*F, i*F_pad + (j+1)*F).  Unused taps/rows stay zero.
    w_wide = np.zeros((H_pad, max_k * F_pad), np.float32)
    b_packed = np.zeros((1, F_pad), np.float32)
    lout = np.zeros((F_pad,), np.float32)                # valid time-steps per column
    for j, (w, b) in enumerate(conv_params):
        k = int(w.shape[0])
        c0 = j * F
        w_np = np.asarray(w, np.float32)                 # (k, H, F)
        for i in range(k):
            w_wide[:H, i * F_pad + c0:i * F_pad + c0 + F] = w_np[i]
        b_packed[0, c0:c0 + F] = np.asarray(b, np.float32).reshape(-1)
        lout[c0:c0 + F] = seq_len - k + 1
    mask = (np.arange(Lmax, dtype=np.float32)[:, None] < lout[None, :]
            ).astype(np.float32)

    C = int(fc_w.shape[1])
    C_pad = _round_up(C, lane)
    fcw_pad = np.zeros((F_pad, C_pad), np.float32)
    fcw_pad[:F_total, :C] = np.asarray(fc_w, np.float32)
    fcb_pad = np.zeros((1, C_pad), np.float32)
    fcb_pad[0, :C] = np.asarray(fc_b, np.float32).reshape(-1)

    return dict(
        w_wide=jnp.asarray(w_wide, compute_dtype),
        b_packed=jnp.asarray(b_packed),
        mask=jnp.asarray(mask),
        fc_w_pad=jnp.asarray(fcw_pad, compute_dtype),
        fc_b_pad=jnp.asarray(fcb_pad),
        seq_pad=int(seq_pad),
        H_pad=int(H_pad),
        num_classes=C,
        compute_dtype=compute_dtype,
    )


# pl.Buffered(1) support probe state: "unknown" -> "yes"/"no" after first call.
_BUFFERED1_STATE = "unknown"


def model_forward(token_ids, params, packed, *, batch_tile=None):
    """Forward pass of the bert_CNN Model (inference / eval mode)."""
    global _BUFFERED1_STATE
    # TODO(synk): the pretrained BERT encoder is not reimplemented here; the
    # encoder output is a deterministic embedding lookup + tanh in plain JAX
    # (could be fused into this kernel via scalar-prefetched row gather).
    H = params["embedding"].shape[1]
    H_pad = packed["H_pad"]
    emb = jnp.pad(params["embedding"], ((0, 0), (0, H_pad - H)))
    # Emit the encoder output lane-dense and directly in bf16: halves the
    # unavoidable HBM round-trip of the (B, S, H) activation.
    encoder_out = jnp.tanh(emb[token_ids]).astype(packed["compute_dtype"])

    B, S = token_ids.shape
    seq_pad = packed["seq_pad"]
    if batch_tile is None:
        # Target ~1024 (Bt * S_pad) rows per grid step without padding the
        # batch beyond need; tune per generation (on v7x keep >= 2 grid steps
        # so both TensorCores get work).
        batch_tile = max(8, min(_round_up(B, 8),
                                _round_up(max(1, 1024 // seq_pad), 8)))

    args = (encoder_out, packed["w_wide"], packed["b_packed"], packed["mask"],
            packed["fc_w_pad"], packed["fc_b_pad"])
    kwargs = dict(batch_tile=batch_tile, seq_pad=seq_pad,
                  num_classes=packed["num_classes"])

    if _BUFFERED1_STATE == "no":
        return fused_textcnn(*args, single_buffer_consts=False, **kwargs)
    if _BUFFERED1_STATE == "yes":
        return fused_textcnn(*args, single_buffer_consts=True, **kwargs)
    try:
        out = jax.block_until_ready(
            fused_textcnn(*args, single_buffer_consts=True, **kwargs))
        _BUFFERED1_STATE = "yes"
        return out
    except Exception:
        # This JAX build rejects pl.Buffered(1); fall back to default
        # double-buffering of the grid-invariant operands.
        _BUFFERED1_STATE = "no"
        return fused_textcnn(*args, single_buffer_consts=False, **kwargs)


# ----------------------------------------------------------------------------
# Reference (pure JAX, f32) for a sanity check
# ----------------------------------------------------------------------------
def reference_forward(token_ids, params):
    enc = jnp.tanh(params["embedding"][token_ids])                  # (B, S, H)
    pooled = []
    for (w, b) in params["convs"]:
        k, _, _ = w.shape
        S = enc.shape[1]
        Lout = S - k + 1
        acc = jnp.zeros((enc.shape[0], Lout, w.shape[2]), jnp.float32)
        for i in range(k):
            acc = acc + jnp.einsum("bth,hf->btf", enc[:, i:i + Lout, :], w[i])
        acc = jax.nn.relu(acc + b[0])
        pooled.append(jnp.max(acc, axis=1))
    out = jnp.concatenate(pooled, axis=1)
    return out @ params["fc_w"] + params["fc_b"][0]


# ----------------------------------------------------------------------------
# Main
# ----------------------------------------------------------------------------
if __name__ == "__main__":
    # Small synthetic config (mirrors the module's __init__ shapes).
    batch = 2
    seq_len = 8
    hidden_size = 32
    num_filters = 4
    filter_sizes = (2, 3, 4)
    num_classes = 3
    vocab_size = 50

    key = jax.random.PRNGKey(0)
    k_emb, k_tok, k_fc_w, k_fc_b, *k_convs = jax.random.split(
        key, 4 + 2 * len(filter_sizes))

    params = {}
    params["embedding"] = (
        jax.random.normal(k_emb, (vocab_size, hidden_size), jnp.float32) * 0.1)

    convs = []
    for i, k in enumerate(filter_sizes):
        kw = jax.random.split(k_convs[i], 2)
        # PyTorch Conv2d weight (num_filters, 1, k, hidden) -> stored (k, hidden, F)
        w = jax.random.normal(kw[0], (k, hidden_size, num_filters),
                              jnp.float32) * 0.1
        b = jax.random.normal(kw[1], (1, num_filters), jnp.float32) * 0.1
        convs.append((w, b))
    params["convs"] = convs

    fin = num_filters * len(filter_sizes)
    # PyTorch Linear weight (num_classes, fin) -> stored transposed (fin, C)
    params["fc_w"] = jax.random.normal(k_fc_w, (fin, num_classes),
                                       jnp.float32) * 0.1
    params["fc_b"] = jax.random.normal(k_fc_b, (1, num_classes),
                                       jnp.float32) * 0.1

    token_ids = jax.random.randint(k_tok, (batch, seq_len), 0, vocab_size)

    packed = pack_params(params["convs"], params["fc_w"], params["fc_b"],
                         seq_len)

    out = model_forward(token_ids, params, packed)
    out = jax.block_until_ready(out)

    ref = reference_forward(token_ids, params)
    assert out.shape == (batch, num_classes), out.shape
    # bf16 matmul inputs (f32 accumulation) vs. the f32 reference -> loosened
    # tolerance per the review.
    assert jnp.allclose(out, ref, atol=2e-2, rtol=2e-2), (out, ref)

    print("KERNEL_OK")
</pallas_src>

<mosaic_0001>
module attributes {stable_mosaic.version = 11 : i64} {
  func.func @fused_textcnn_kernel(%arg0: i32, %arg1: memref<8x16x128xbf16, #tpu.memory_space<vmem>>, %arg2: memref<128x512xbf16, #tpu.memory_space<vmem>>, %arg3: memref<1x128xf32, #tpu.memory_space<vmem>>, %arg4: memref<8x128xf32, #tpu.memory_space<vmem>>, %arg5: memref<128x128xbf16, #tpu.memory_space<vmem>>, %arg6: memref<1x128xf32, #tpu.memory_space<vmem>>, %arg7: memref<8x128xf32, #tpu.memory_space<vmem>>) attributes {dimension_semantics = [#tpu.dimension_semantics<parallel>], iteration_bounds = array<i64: 1>, scalar_prefetch = 0 : i64, scratch_operands = 0 : i64, tpu.core_type = #tpu.core_type<tc>, window_params = [{transform_indices = @transform_0, window_bounds = array<i64: 8, 16, 128>}, {pipeline_mode = #tpu.pipeline_mode<synchronous>, transform_indices = @transform_1, window_bounds = array<i64: 128, 512>}, {pipeline_mode = #tpu.pipeline_mode<synchronous>, transform_indices = @transform_2, window_bounds = array<i64: 1, 128>}, {pipeline_mode = #tpu.pipeline_mode<synchronous>, transform_indices = @transform_3, window_bounds = array<i64: 8, 128>}, {pipeline_mode = #tpu.pipeline_mode<synchronous>, transform_indices = @transform_4, window_bounds = array<i64: 128, 128>}, {pipeline_mode = #tpu.pipeline_mode<synchronous>, transform_indices = @transform_5, window_bounds = array<i64: 1, 128>}, {transform_indices = @transform_6, window_bounds = array<i64: 8, 128>}]} {
    %c0 = arith.constant 0 : index
    %c0_0 = arith.constant 0 : index
    %c0_1 = arith.constant 0 : index
    %0 = vector.load %arg1[%c0, %c0_0, %c0_1] : memref<8x16x128xbf16, #tpu.memory_space<vmem>>, vector<8x16x128xbf16>
    %1 = vector.shape_cast %0 : vector<8x16x128xbf16> to vector<128x128xbf16>
    %c0_2 = arith.constant 0 : index
    %c0_3 = arith.constant 0 : index
    %2 = vector.load %arg2[%c0_2, %c0_3] : memref<128x512xbf16, #tpu.memory_space<vmem>>, vector<128x512xbf16>
    %cst = arith.constant dense<0.000000e+00> : vector<128x512xf32>
    %3 = tpu.matmul %1, %2, %cst {dimension_numbers = #tpu.dot_dimension_numbers<[1], [0], [0], [1], [0, 0, 1, 1], [], []>} : vector<128x128xbf16>, vector<128x512xbf16>, vector<128x512xf32> -> vector<128x512xf32>
    %4 = vector.shape_cast %3 : vector<128x512xf32> to vector<8x16x512xf32>
    %5 = vector.extract_strided_slice %4 {offsets = [0, 0, 0], sizes = [8, 8, 128], strides = [1, 1, 1]} : vector<8x16x512xf32> to vector<8x8x128xf32>
    %c0_4 = arith.constant 0 : index
    %c0_5 = arith.constant 0 : index
    %6 = vector.load %arg3[%c0_4, %c0_5] : memref<1x128xf32, #tpu.memory_space<vmem>>, vector<1x128xf32>
    %7 = vector.shape_cast %6 : vector<1x128xf32> to vector<1x1x128xf32>
    %8 = vector.broadcast %7 : vector<1x1x128xf32> to vector<8x8x128xf32>
    %9 = arith.addf %5, %8 : vector<8x8x128xf32>
    %10 = vector.extract_strided_slice %4 {offsets = [0, 1, 128], sizes = [8, 8, 128], strides = [1, 1, 1]} : vector<8x16x512xf32> to vector<8x8x128xf32>
    %11 = arith.addf %9, %10 : vector<8x8x128xf32>
    %12 = vector.extract_strided_slice %4 {offsets = [0, 2, 256], sizes = [8, 8, 128], strides = [1, 1, 1]} : vector<8x16x512xf32> to vector<8x8x128xf32>
    %13 = arith.addf %11, %12 : vector<8x8x128xf32>
    %14 = vector.extract_strided_slice %4 {offsets = [0, 3, 384], sizes = [8, 8, 128], strides = [1, 1, 1]} : vector<8x16x512xf32> to vector<8x8x128xf32>
    %15 = arith.addf %13, %14 : vector<8x8x128xf32>
    %cst_6 = arith.constant 0.000000e+00 : f32
    %16 = vector.broadcast %cst_6 : f32 to vector<8x8x128xf32>
    %17 = arith.maximumf %15, %16 : vector<8x8x128xf32>
    %c0_7 = arith.constant 0 : index
    %c0_8 = arith.constant 0 : index
    %18 = vector.load %arg4[%c0_7, %c0_8] : memref<8x128xf32, #tpu.memory_space<vmem>>, vector<8x128xf32>
    %19 = vector.shape_cast %18 : vector<8x128xf32> to vector<1x8x128xf32>
    %20 = vector.broadcast %19 : vector<1x8x128xf32> to vector<8x8x128xf32>
    %21 = arith.mulf %17, %20 : vector<8x8x128xf32>
    %cst_9 = arith.constant dense<0xFF800000> : vector<8x128xf32>
    %22 = vector.multi_reduction <maximumf>, %21, %cst_9 [1] : vector<8x8x128xf32> to vector<8x128xf32>
    %23 = arith.truncf %22 : vector<8x128xf32> to vector<8x128xbf16>
    %c0_10 = arith.constant 0 : index
    %c0_11 = arith.constant 0 : index
    %24 = vector.load %arg5[%c0_10, %c0_11] : memref<128x128xbf16, #tpu.memory_space<vmem>>, vector<128x128xbf16>
    %cst_12 = arith.constant dense<0.000000e+00> : vector<8x128xf32>
    %25 = tpu.matmul %23, %24, %cst_12 {dimension_numbers = #tpu.dot_dimension_numbers<[1], [0], [0], [1], [0, 0, 1, 1], [], []>} : vector<8x128xbf16>, vector<128x128xbf16>, vector<8x128xf32> -> vector<8x128xf32>
    %c0_13 = arith.constant 0 : index
    %c0_14 = arith.constant 0 : index
    %26 = vector.load %arg6[%c0_13, %c0_14] : memref<1x128xf32, #tpu.memory_space<vmem>>, vector<1x128xf32>
    %27 = vector.broadcast %26 : vector<1x128xf32> to vector<8x128xf32>
    %28 = arith.addf %25, %27 : vector<8x128xf32>
    %c0_15 = arith.constant 0 : index
    %c0_16 = arith.constant 0 : index
    %29 = vector.load %arg7[%c0_15, %c0_16] : memref<8x128xf32, #tpu.memory_space<vmem>>, vector<8x128xf32>
    tpu.vector_store %arg7[%c0_15, %c0_16], %28 {strides = array<i32>} : memref<8x128xf32, #tpu.memory_space<vmem>>, vector<8x128xf32>,
    return
  }
  func.func @transform_0(%arg0: i32) -> (i32, i32, i32) {
    %c0_i32 = arith.constant 0 : i32
    %c0_i32_0 = arith.constant 0 : i32
    %c0_i32_1 = arith.constant 0 : i32
    return %arg0, %c0_i32, %c0_i32_0 : i32, i32, i32
  }
  func.func @transform_1(%arg0: i32) -> (i32, i32) {
    %c0_i32 = arith.constant 0 : i32
    %c0_i32_0 = arith.constant 0 : i32
    %c0_i32_1 = arith.constant 0 : i32
    return %c0_i32, %c0_i32_0 : i32, i32
  }
  func.func @transform_2(%arg0: i32) -> (i32, i32) {
    %c0_i32 = arith.constant 0 : i32
    %c0_i32_0 = arith.constant 0 : i32
    %c0_i32_1 = arith.constant 0 : i32
    return %c0_i32, %c0_i32_0 : i32, i32
  }
  func.func @transform_3(%arg0: i32) -> (i32, i32) {
    %c0_i32 = arith.constant 0 : i32
    %c0_i32_0 = arith.constant 0 : i32
    %c0_i32_1 = arith.constant 0 : i32
    return %c0_i32, %c0_i32_0 : i32, i32
  }
  func.func @transform_4(%arg0: i32) -> (i32, i32) {
    %c0_i32 = arith.constant 0 : i32
    %c0_i32_0 = arith.constant 0 : i32
    %c0_i32_1 = arith.constant 0 : i32
    return %c0_i32, %c0_i32_0 : i32, i32
  }
  func.func @transform_5(%arg0: i32) -> (i32, i32) {
    %c0_i32 = arith.constant 0 : i32
    %c0_i32_0 = arith.constant 0 : i32
    %c0_i32_1 = arith.constant 0 : i32
    return %c0_i32, %c0_i32_0 : i32, i32
  }
  func.func @transform_6(%arg0: i32) -> (i32, i32) {
    %c0_i32 = arith.constant 0 : i32
    %c0_i32_0 = arith.constant 0 : i32
    return %arg0, %c0_i32 : i32, i32
  }
}

module attributes {stable_mosaic.version = 11 : i64} {
  func.func @fused_textcnn_kernel(%arg0: i32, %arg1: memref<8x16x128xbf16, #tpu.memory_space<vmem>>, %arg2: memref<128x512xbf16, #tpu.memory_space<vmem>>, %arg3: memref<1x128xf32, #tpu.memory_space<vmem>>, %arg4: memref<8x128xf32, #tpu.memory_space<vmem>>, %arg5: memref<128x128xbf16, #tpu.memory_space<vmem>>, %arg6: memref<1x128xf32, #tpu.memory_space<vmem>>, %arg7: memref<8x128xf32, #tpu.memory_space<vmem>>) attributes {dimension_semantics = [#tpu.dimension_semantics<parallel>], iteration_bounds = array<i64: 1>, scalar_prefetch = 0 : i64, scratch_operands = 0 : i64, tpu.core_type = #tpu.core_type<tc>, window_params = [{transform_indices = @transform_0, window_bounds = array<i64: 8, 16, 128>}, {pipeline_mode = #tpu.pipeline_mode<synchronous>, transform_indices = @transform_1, window_bounds = array<i64: 128, 512>}, {pipeline_mode = #tpu.pipeline_mode<synchronous>, transform_indices = @transform_2, window_bounds = array<i64: 1, 128>}, {pipeline_mode = #tpu.pipeline_mode<synchronous>, transform_indices = @transform_3, window_bounds = array<i64: 8, 128>}, {pipeline_mode = #tpu.pipeline_mode<synchronous>, transform_indices = @transform_4, window_bounds = array<i64: 128, 128>}, {pipeline_mode = #tpu.pipeline_mode<synchronous>, transform_indices = @transform_5, window_bounds = array<i64: 1, 128>}, {transform_indices = @transform_6, window_bounds = array<i64: 8, 128>}]} {
    %c0 = arith.constant 0 : index
    %c0_0 = arith.constant 0 : index
    %c0_1 = arith.constant 0 : index
    %0 = vector.load %arg1[%c0, %c0_0, %c0_1] : memref<8x16x128xbf16, #tpu.memory_space<vmem>>, vector<8x16x128xbf16>
    %1 = vector.shape_cast %0 : vector<8x16x128xbf16> to vector<128x128xbf16>
    %c0_2 = arith.constant 0 : index
    %c0_3 = arith.constant 0 : index
    %2 = vector.load %arg2[%c0_2, %c0_3] : memref<128x512xbf16, #tpu.memory_space<vmem>>, vector<128x512xbf16>
    %cst = arith.constant dense<0.000000e+00> : vector<128x512xf32>
    %3 = tpu.matmul %1, %2, %cst {dimension_numbers = #tpu.dot_dimension_numbers<[1], [0], [0], [1], [0, 0, 1, 1], [], []>} : vector<128x128xbf16>, vector<128x512xbf16>, vector<128x512xf32> -> vector<128x512xf32>
    %4 = vector.shape_cast %3 : vector<128x512xf32> to vector<8x16x512xf32>
    %5 = vector.extract_strided_slice %4 {offsets = [0, 0, 0], sizes = [8, 8, 128], strides = [1, 1, 1]} : vector<8x16x512xf32> to vector<8x8x128xf32>
    %c0_4 = arith.constant 0 : index
    %c0_5 = arith.constant 0 : index
    %6 = vector.load %arg3[%c0_4, %c0_5] : memref<1x128xf32, #tpu.memory_space<vmem>>, vector<1x128xf32>
    %7 = vector.shape_cast %6 : vector<1x128xf32> to vector<1x1x128xf32>
    %8 = vector.broadcast %7 : vector<1x1x128xf32> to vector<8x8x128xf32>
    %9 = arith.addf %5, %8 : vector<8x8x128xf32>
    %10 = vector.extract_strided_slice %4 {offsets = [0, 1, 128], sizes = [8, 8, 128], strides = [1, 1, 1]} : vector<8x16x512xf32> to vector<8x8x128xf32>
    %11 = arith.addf %9, %10 : vector<8x8x128xf32>
    %12 = vector.extract_strided_slice %4 {offsets = [0, 2, 256], sizes = [8, 8, 128], strides = [1, 1, 1]} : vector<8x16x512xf32> to vector<8x8x128xf32>
    %13 = arith.addf %11, %12 : vector<8x8x128xf32>
    %14 = vector.extract_strided_slice %4 {offsets = [0, 3, 384], sizes = [8, 8, 128], strides = [1, 1, 1]} : vector<8x16x512xf32> to vector<8x8x128xf32>
    %15 = arith.addf %13, %14 : vector<8x8x128xf32>
    %cst_6 = arith.constant 0.000000e+00 : f32
    %16 = vector.broadcast %cst_6 : f32 to vector<8x8x128xf32>
    %17 = arith.maximumf %15, %16 : vector<8x8x128xf32>
    %c0_7 = arith.constant 0 : index
    %c0_8 = arith.constant 0 : index
    %18 = vector.load %arg4[%c0_7, %c0_8] : memref<8x128xf32, #tpu.memory_space<vmem>>, vector<8x128xf32>
    %19 = vector.shape_cast %18 : vector<8x128xf32> to vector<1x8x128xf32>
    %20 = vector.broadcast %19 : vector<1x8x128xf32> to vector<8x8x128xf32>
    %21 = arith.mulf %17, %20 : vector<8x8x128xf32>
    %cst_9 = arith.constant dense<0xFF800000> : vector<8x128xf32>
    %22 = vector.multi_reduction <maximumf>, %21, %cst_9 [1] : vector<8x8x128xf32> to vector<8x128xf32>
    %23 = arith.truncf %22 : vector<8x128xf32> to vector<8x128xbf16>
    %c0_10 = arith.constant 0 : index
    %c0_11 = arith.constant 0 : index
    %24 = vector.load %arg5[%c0_10, %c0_11] : memref<128x128xbf16, #tpu.memory_space<vmem>>, vector<128x128xbf16>
    %cst_12 = arith.constant dense<0.000000e+00> : vector<8x128xf32>
    %25 = tpu.matmul %23, %24, %cst_12 {dimension_numbers = #tpu.dot_dimension_numbers<[1], [0], [0], [1], [0, 0, 1, 1], [], []>} : vector<8x128xbf16>, vector<128x128xbf16>, vector<8x128xf32> -> vector<8x128xf32>
    %c0_13 = arith.constant 0 : index
    %c0_14 = arith.constant 0 : index
    %26 = vector.load %arg6[%c0_13, %c0_14] : memref<1x128xf32, #tpu.memory_space<vmem>>, vector<1x128xf32>
    %27 = vector.broadcast %26 : vector<1x128xf32> to vector<8x128xf32>
    %28 = arith.addf %25, %27 : vector<8x128xf32>
    %c0_15 = arith.constant 0 : index
    %c0_16 = arith.constant 0 : index
    %29 = vector.load %arg7[%c0_15, %c0_16] : memref<8x128xf32, #tpu.memory_space<vmem>>, vector<8x128xf32>
    tpu.vector_store %arg7[%c0_15, %c0_16], %28 {strides = array<i32>} : memref<8x128xf32, #tpu.memory_space<vmem>>, vector<8x128xf32>,
    return
  }
  func.func @transform_0(%arg0: i32) -> (i32, i32, i32) {
    %c0_i32 = arith.constant 0 : i32
    %c0_i32_0 = arith.constant 0 : i32
    %c0_i32_1 = arith.constant 0 : i32
    return %arg0, %c0_i32, %c0_i32_0 : i32, i32, i32
  }
  func.func @transform_1(%arg0: i32) -> (i32, i32) {
    %c0_i32 = arith.constant 0 : i32
    %c0_i32_0 = arith.constant 0 : i32
    %c0_i32_1 = arith.constant 0 : i32
    return %c0_i32, %c0_i32_0 : i32, i32
  }
  func.func @transform_2(%arg0: i32) -> (i32, i32) {
    %c0_i32 = arith.constant 0 : i32
    %c0_i32_0 = arith.constant 0 : i32
    %c0_i32_1 = arith.constant 0 : i32
    return %c0_i32, %c0_i32_0 : i32, i32
  }
  func.func @transform_3(%arg0: i32) -> (i32, i32) {
    %c0_i32 = arith.constant 0 : i32
    %c0_i32_0 = arith.constant 0 : i32
    %c0_i32_1 = arith.constant 0 : i32
    return %c0_i32, %c0_i32_0 : i32, i32
  }
  func.func @transform_4(%arg0: i32) -> (i32, i32) {
    %c0_i32 = arith.constant 0 : i32
    %c0_i32_0 = arith.constant 0 : i32
    %c0_i32_1 = arith.constant 0 : i32
    return %c0_i32, %c0_i32_0 : i32, i32
  }
  func.func @transform_5(%arg0: i32) -> (i32, i32) {
    %c0_i32 = arith.constant 0 : i32
    %c0_i32_0 = arith.constant 0 : i32
    %c0_i32_1 = arith.constant 0 : i32
    return %c0_i32, %c0_i32_0 : i32, i32
  }
  func.func @transform_6(%arg0: i32) -> (i32, i32) {
    %c0_i32 = arith.constant 0 : i32
    %c0_i32_0 = arith.constant 0 : i32
    return %arg0, %c0_i32 : i32, i32
  }
}

</mosaic_0001>

<bundles_post_ra>
// kernel: fused_textcnn.1
= control target key start
LH: loop header
LB: loop body
LE: loop exit
PB: predicated region body
PF: predicated region fallthrough
CT: control target
= control target key end

     0   :  { %11 = vsyncpa [#allocation3], 0  ;;  %s1129_s24 = smov [#allocation2]   ;;  %s1130_s26 = smov 256   ;;  %s1280_s0 = inlined_call_operand.vmem [shape: bf16[8,16,128], index: 0, kind: input, shape index: {}]   ;;  %s1281_s1 = inlined_call_operand.hbm [shape: bf16[128,512], index: 1, kind: input, shape index: {}]   ;;  %s1282_s2 = inlined_call_operand.vmem [shape: f32[1,128], index: 2, kind: input, shape index: {}]   ;;  %s1283_s3 = inlined_call_operand.vmem [shape: f32[8,128], index: 3, kind: input, shape index: {}]   ;;  %s1284_s4 = inlined_call_operand.vmem [shape: bf16[128,128], index: 4, kind: input, shape index: {}]   ;;  %s1285_s5 = inlined_call_operand.vmem [shape: f32[1,128], index: 5, kind: input, shape index: {}]   ;;  %s1286_s6 = inlined_call_operand.vmem [shape: f32[8,128], index: 6, kind: output, shape index: {}]  }
   0x1   :  { %s18_s23 = sshll.u32 %s1281_s1, 4  ;;  %s20_s25 = sshll.u32 %s1129_s24, 4  ;;  %s19_s23 = int_to_ptr.hbm [resolvable:$true] %s18_s23  ;;  %s21_s25 = int_to_ptr.vmem [resolvable:$true] %s20_s25 }
   0x2   :  { %s1131_s27 = smov 16  }
   0x3   :  { %26 = dma.hbm_to_vmem [thread:$0]  %s19_s23, 4096, %s21_s25, [#allocation3], %s1130_s26, %s1130_s26, %s1131_s27  }
   0x4   :  { %1127 = dma.done.wait [#allocation3], 4096  }
   0x5   :  { %1128 = vsyncadd [#allocation3], 4294963200  ;;  %v1086_v0 = vld [vmem:[#allocation2 + $0xe4] sm:$0xf]  ;;  %v1006_v1 = vld [vmem:[#allocation2 + $0xf0] sm:$0xf0] }
   0x6   :  { %v1012_v2 = vld [vmem:[#allocation2 + $0xe8] sm:$0xf]  ;;  %v1009_v3 = vor.u32 %v1086_v0, %v1006_v1  ;;  %v1089_v4 = vld [vmem:[#allocation2 + $0xf4] sm:$0xf0]  ;;  %v1087_v5 = vld [vmem:[#allocation2 + $0xec] sm:$0xf] }
   0x7   :  { %v1014_v6 = vld [vmem:[#allocation2 + $0xf8] sm:$0xf0]  ;;  %v1013_v7 = vor.u32 %v1089_v4, %v1012_v2  ;;  %v1082_v9 = vld [vmem:[#allocation2 + $0xc4] sm:$0xf]  ;;  %v990_v10 = vld [vmem:[#allocation2 + $0xd0] sm:$0xf0] }
   0x8   :  { %v1017_v8 = vor.u32 %v1087_v5, %v1014_v6  ;;  %v996_v11 = vld [vmem:[#allocation2 + $0xc8] sm:$0xf]  ;;  %336 = vmatpush.bf16.msra.mxu1 %v1009_v3  ;;  %v993_v12 = vor.u32 %v1082_v9, %v990_v10  ;;  %v1085_v13 = vld [vmem:[#allocation2 + $0xd4] sm:$0xf0]  ;;  %v1083_v14 = vld [vmem:[#allocation2 + $0xcc] sm:$0xf] }
   0x9   :  { %v998_v15 = vld [vmem:[#allocation2 + $0xd8] sm:$0xf0]  ;;  %385 = vmatpush.bf16.msra.mxu2 %v1013_v7  ;;  %v997_v16 = vor.u32 %v1085_v13, %v996_v11  ;;  %v1004_v18 = vld [vmem:[#allocation2 + $0xe0] sm:$0xf]  ;;  %v1088_v19 = vld [vmem:[#allocation2 + $0xec] sm:$0xf0] }
   0xa   :  { %434 = vmatpush.bf16.msra.mxu3 %v1017_v8  ;;  %v1001_v17 = vor.u32 %v1083_v14, %v998_v15  ;;  %v1078_v20 = vld [vmem:[#allocation2 + $0xa4] sm:$0xf]  ;;  %v1005_v21 = vor.u32 %v1088_v19, %v1004_v18  ;;  %v974_v22 = vld [vmem:[#allocation2 + $0xb0] sm:$0xf0]  ;;  %v980_v23 = vld [vmem:[#allocation2 + $0xa8] sm:$0xf] }
   0xb   :  { %v1081_v24 = vld [vmem:[#allocation2 + $0xb4] sm:$0xf0]  ;;  %v1079_v25 = vld [vmem:[#allocation2 + $0xac] sm:$0xf]  ;;  %v982_v26 = vld [vmem:[#allocation2 + $0xb8] sm:$0xf0]  ;;  %v977_v28 = vor.u32 %v1078_v20, %v974_v22 }
   0xc   :  { %v988_v27 = vld [vmem:[#allocation2 + $0xc0] sm:$0xf]  ;;  %337 = vmatpush.bf16.msra.mxu1 %v993_v12  ;;  %295 = vmatpush.bf16.msra.mxu0 %v1005_v21  ;;  %v1084_v29 = vld [vmem:[#allocation2 + $0xcc] sm:$0xf0]  ;;  %v1074_v30 = vld [vmem:[#allocation2 + $0x84] sm:$0xf]  ;;  %v981_v32 = vor.u32 %v1081_v24, %v980_v23  ;;  %v985_v33 = vor.u32 %v1079_v25, %v982_v26 }
   0xd   :  { %v958_v31 = vld [vmem:[#allocation2 + $0x90] sm:$0xf0]  ;;  %386 = vmatpush.bf16.msra.mxu2 %v997_v16  ;;  %v989_v34 = vor.u32 %v1084_v29, %v988_v27  ;;  %v964_v35 = vld [vmem:[#allocation2 + $0x88] sm:$0xf]  ;;  %v1077_v36 = vld [vmem:[#allocation2 + $0x94] sm:$0xf0] }
   0xe   :  { %435 = vmatpush.bf16.msra.mxu3 %v1001_v17  ;;  %v1075_v37 = vld [vmem:[#allocation2 + $0x8c] sm:$0xf]  ;;  %v966_v38 = vld [vmem:[#allocation2 + $0x98] sm:$0xf0]  ;;  %v972_v39 = vld [vmem:[#allocation2 + $0xa0] sm:$0xf]  ;;  %v961_v41 = vor.u32 %v1074_v30, %v958_v31  ;;  %v965_v45 = vor.u32 %v1077_v36, %v964_v35 }
   0xf   :  { %v1080_v40 = vld [vmem:[#allocation2 + $0xac] sm:$0xf0]  ;;  %v1070_v43 = vld [vmem:[#allocation2 + $0x64] sm:$0xf]  ;;  %v942_v44 = vld [vmem:[#allocation2 + $0x70] sm:$0xf0]  ;;  %v969_v46 = vor.u32 %v1075_v37, %v966_v38 }
  0x10   :  { %338 = vmatpush.bf16.msra.mxu1 %v977_v28  ;;  %296 = vmatpush.bf16.msra.mxu0 %v989_v34  ;;  %v973_v42 = vor.u32 %v1080_v40, %v972_v39  ;;  %v948_v47 = vld [vmem:[#allocation2 + $0x68] sm:$0xf]  ;;  %v956_v48 = vld [vmem:[#allocation2 + $0x80] sm:$0xf]  ;;  %v1076_v49 = vld [vmem:[#allocation2 + $0x8c] sm:$0xf0]  ;;  %v945_v53 = vor.u32 %v1070_v43, %v942_v44 }
  0x11   :  { %387 = vmatpush.bf16.msra.mxu2 %v981_v32  ;;  %v1073_v50 = vld [vmem:[#allocation2 + $0x74] sm:$0xf0]  ;;  %v1071_v51 = vld [vmem:[#allocation2 + $0x6c] sm:$0xf]  ;;  %v950_v52 = vld [vmem:[#allocation2 + $0x78] sm:$0xf0]  ;;  %v957_v54 = vor.u32 %v1076_v49, %v956_v48 }
  0x12   :  { %436 = vmatpush.bf16.msra.mxu3 %v985_v33  ;;  %v1066_v55 = vld [vmem:[#allocation2 + $0x44] sm:$0xf]  ;;  %v926_v56 = vld [vmem:[#allocation2 + $0x50] sm:$0xf0]  ;;  %v949_v57 = vor.u32 %v1073_v50, %v948_v47  ;;  %v953_v58 = vor.u32 %v1071_v51, %v950_v52  ;;  %v932_v59 = vld [vmem:[#allocation2 + $0x48] sm:$0xf] }
  0x13   :  { %v940_v60 = vld [vmem:[#allocation2 + $0x60] sm:$0xf]  ;;  %v1072_v61 = vld [vmem:[#allocation2 + $0x6c] sm:$0xf0]  ;;  %v1069_v62 = vld [vmem:[#allocation2 + $0x54] sm:$0xf0]  ;;  %v929_v1 = vor.u32 %v1066_v55, %v926_v56 }
  0x14   :  { %339 = vmatpush.bf16.msra.mxu1 %v961_v41  ;;  %297 = vmatpush.bf16.msra.mxu0 %v973_v42  ;;  %v1067_v63 = vld [vmem:[#allocation2 + $0x4c] sm:$0xf]  ;;  %v934_v0 = vld [vmem:[#allocation2 + $0x58] sm:$0xf0]  ;;  %v941_v2 = vor.u32 %v1072_v61, %v940_v60  ;;  %v1062_v3 = vld [vmem:[#allocation2 + $0x24] sm:$0xf]  ;;  %v933_v5 = vor.u32 %v1069_v62, %v932_v59 }
  0x15   :  { %388 = vmatpush.bf16.msra.mxu2 %v965_v45  ;;  %v910_v4 = vld [vmem:[#allocation2 + $0x30] sm:$0xf0]  ;;  %v937_v6 = vor.u32 %v1067_v63, %v934_v0  ;;  %v916_v7 = vld [vmem:[#allocation2 + $0x28] sm:$0xf]  ;;  %v924_v8 = vld [vmem:[#allocation2 + $0x40] sm:$0xf] }
  0x16   :  { %437 = vmatpush.bf16.msra.mxu3 %v969_v46  ;;  %v1068_v9 = vld [vmem:[#allocation2 + $0x4c] sm:$0xf0]  ;;  %v1065_v10 = vld [vmem:[#allocation2 + $0x34] sm:$0xf0]  ;;  %v1063_v11 = vld [vmem:[#allocation2 + $0x2c] sm:$0xf]  ;;  %v913_v13 = vor.u32 %v1062_v3, %v910_v4 }
  0x17   :  { %v918_v12 = vld [vmem:[#allocation2 + $0x38] sm:$0xf0]  ;;  %v925_v14 = vor.u32 %v1068_v9, %v924_v8  ;;  %v1058_v15 = vld [vmem:[#allocation2 + $0x4] sm:$0xf]  ;;  %v894_v16 = vld [vmem:[#allocation2 + $0x10] sm:$0xf0]  ;;  %v917_v17 = vor.u32 %v1065_v10, %v916_v7 }
  0x18   :  { %340 = vmatpush.bf16.msra.mxu1 %v945_v53  ;;  %298 = vmatpush.bf16.msra.mxu0 %v957_v54  ;;  %v921_v18 = vor.u32 %v1063_v11, %v918_v12  ;;  %v900_v19 = vld [vmem:[#allocation2 + $0x8] sm:$0xf]  ;;  %v908_v20 = vld [vmem:[#allocation2 + $0x20] sm:$0xf]  ;;  %v1064_v21 = vld [vmem:[#allocation2 + $0x2c] sm:$0xf0]  ;;  %v897_v25 = vor.u32 %v1058_v15, %v894_v16 }
  0x19   :  { %389 = vmatpush.bf16.msra.mxu2 %v949_v57  ;;  %v1061_v22 = vld [vmem:[#allocation2 + $0x14] sm:$0xf0]  ;;  %v1059_v23 = vld [vmem:[#allocation2 + $0xc] sm:$0xf]  ;;  %v902_v24 = vld [vmem:[#allocation2 + $0x18] sm:$0xf0]  ;;  %v909_v26 = vor.u32 %v1064_v21, %v908_v20 }
  0x1a   :  { %438 = vmatpush.bf16.msra.mxu3 %v953_v58  ;;  %v901_v27 = vor.u32 %v1061_v22, %v900_v19  ;;  %v905_v28 = vor.u32 %v1059_v23, %v902_v24  ;;  %v892_v29 = vld [vmem:[#allocation2] sm:$0xf]  ;;  %v1060_v30 = vld [vmem:[#allocation2 + $0xc] sm:$0xf0]  ;;  %v1051_v33 = vld [vmem:[%s1280_s0 + $0x8] sm:$0xff]  ;;  %vm511_vm0 = vcmask 1046528  }
  0x1b   :  { %v1050_v31 = vld [vmem:[%s1280_s0] sm:$0xff]  ;;  %v893_v32 = vor.u32 %v1060_v30, %v892_v29  ;;  %v1052_v34 = vld [vmem:[%s1280_s0 + $0x10] sm:$0xff]  ;;  %v1053_v35 = vld [vmem:[%s1280_s0 + $0x18] sm:$0xff]  ;;  %vm568_vm1 = vcmask 1045504   ;;  %vm625_vm2 = vcmask 1044480   ;;  %vm775_vm3 = vcmask 1041409  }
  0x1c   :  { %341 = vmatpush.bf16.msra.mxu1 %v929_v1  ;;  %299 = vmatpush.bf16.msra.mxu0 %v941_v2  ;;  %v1054_v36 = vld [vmem:[%s1280_s0 + $0x20] sm:$0xff]  ;;  %v1055_v37 = vld [vmem:[%s1280_s0 + $0x28] sm:$0xff]  ;;  %v1056_v38 = vld [vmem:[%s1280_s0 + $0x30] sm:$0xff]  ;;  %vm777_vm4 = vcmask 1042434   ;;  %vm779_vm5 = vcmask 1043459   ;;  %vm781_vm6 = vcmask 1044484  }
  0x1d   :  { %390 = vmatpush.bf16.msra.mxu2 %v933_v5  ;;  %v1057_v39 = vld [vmem:[%s1280_s0 + $0x38] sm:$0xff]  ;;  %v1197_v41 = vld [vmem:[%s1282_s2] ss:$0 sm:$0xff]  ;;  %v1096_v10 = vld [vmem:[%s1284_s4 + $0x30] sm:$0xff]  ;;  %vm783_vm7 = vcmask 1045509   ;;  %vm785_vm8 = vcmask 1046534  }
  0x1e   :  { %439 = vmatpush.bf16.msra.mxu3 %v937_v6  ;;  %v1097_v49 = vld [vmem:[%s1284_s4 + $0x38] sm:$0xff]  ;;  %v1209_v1 = vld [vmem:[%s1283_s3] sm:$0xff]  ;;  %vm787_vm9 = vcmask 1047559  }
  0x20   :  { %342 = vmatpush.bf16.msra.mxu1 %v913_v13  ;;  %300 = vmatpush.bf16.msra.mxu0 %v925_v14 }
  0x21   :  { %391 = vmatpush.bf16.msra.mxu2 %v917_v17 }
  0x22   :  { %440 = vmatpush.bf16.msra.mxu3 %v921_v18 }
  0x24   :  { %343 = vmatpush.bf16.msra.mxu1 %v897_v25  ;;  %301 = vmatpush.bf16.msra.mxu0 %v909_v26 }
  0x25   :  { %392 = vmatpush.bf16.msra.mxu2 %v901_v27 }
  0x26   :  { %441 = vmatpush.bf16.msra.mxu3 %v905_v28 }
  0x27   :  { %344 = vmatmul.bf16.vlgmr.msra.gmra.mxu1 %v1050_v31 }
  0x28   :  { %393 = vmatmul.bf16.vlgmr.msra.gmra.mxu2 %v1050_v31  ;;  %302 = vmatpush.bf16.msra.mxu0 %v893_v32 }
  0x29   :  { %442 = vmatmul.bf16.vlgmr.msra.gmra.mxu3 %v1050_v31 }
  0x2b   :  { %303 = vmatmul.bf16.vlgmr.msra.gmra.mxu0 %v1050_v31 }
  0x2c   :  { %839 = vmatpush.bf16.msrb.mxu0 %v1097_v49 }
  0x30   :  { %840 = vmatpush.bf16.msrb.mxu0 %v1096_v10 }
  0x37   :  { %349 = vmatmul.bf16.gmra.mxu1 %v1051_v33 }
  0x38   :  { %398 = vmatmul.bf16.gmra.mxu2 %v1051_v33 }
  0x39   :  { %447 = vmatmul.bf16.gmra.mxu3 %v1051_v33 }
  0x3b   :  { %307 = vmatmul.bf16.gmra.mxu0 %v1051_v33 }
  0x47   :  { %354 = vmatmul.bf16.gmra.mxu1 %v1052_v34 }
  0x48   :  { %403 = vmatmul.bf16.gmra.mxu2 %v1052_v34 }
  0x49   :  { %452 = vmatmul.bf16.gmra.mxu3 %v1052_v34 }
  0x4b   :  { %311 = vmatmul.bf16.gmra.mxu0 %v1052_v34 }
  0x57   :  { %359 = vmatmul.bf16.gmra.mxu1 %v1053_v35 }
  0x58   :  { %408 = vmatmul.bf16.gmra.mxu2 %v1053_v35 }
  0x59   :  { %457 = vmatmul.bf16.gmra.mxu3 %v1053_v35 }
  0x5b   :  { %315 = vmatmul.bf16.gmra.mxu0 %v1053_v35 }
  0x67   :  { %364 = vmatmul.bf16.gmra.mxu1 %v1054_v36 }
  0x68   :  { %413 = vmatmul.bf16.gmra.mxu2 %v1054_v36 }
  0x69   :  { %462 = vmatmul.bf16.gmra.mxu3 %v1054_v36 }
  0x6b   :  { %319 = vmatmul.bf16.gmra.mxu0 %v1054_v36 }
  0x77   :  { %369 = vmatmul.bf16.gmra.mxu1 %v1055_v37 }
  0x78   :  { %418 = vmatmul.bf16.gmra.mxu2 %v1055_v37 }
  0x79   :  { %467 = vmatmul.bf16.gmra.mxu3 %v1055_v37 }
  0x7b   :  { %323 = vmatmul.bf16.gmra.mxu0 %v1055_v37 }
  0x87   :  { %374 = vmatmul.bf16.gmra.mxu1 %v1056_v38 }
  0x88   :  { %423 = vmatmul.bf16.gmra.mxu2 %v1056_v38 }
  0x89   :  { %472 = vmatmul.bf16.gmra.mxu3 %v1056_v38 }
  0x8b   :  { %327 = vmatmul.bf16.gmra.mxu0 %v1056_v38  ;;  %v1095_v38 = vld [vmem:[%s1284_s4 + $0x28] sm:$0xff] }
  0x8c   :  { %841 = vmatpush.bf16.msrb.mxu0 %v1095_v38 }
  0x97   :  { %379 = vmatmul.bf16.gmra.mxu1 %v1057_v39 }
  0x98   :  { %428 = vmatmul.bf16.gmra.mxu2 %v1057_v39 }
  0x99   :  { %477 = vmatmul.bf16.gmra.mxu3 %v1057_v39 }
  0x9b   :  { %331 = vmatmul.bf16.gmra.mxu0 %v1057_v39 }
  0xa4   :  { %v345_v40 = vpop.f32.mrf.mxu1 }
  0xa5   :  { %v512_v47 = vrot.slane %v345_v40, 1 }
  0xa8   :  { %v304_v42 = vpop.f32.mrf.mxu0 }
  0xa9   :  { %v487_v45 = vadd.f32 %v1197_v41, %v304_v42 }
  0xab   :  { %v394_v43 = vpop.f32.mrf.mxu2 }
  0xac   :  { %v443_v44 = vpop.f32.mrf.mxu3  ;;  %v347_v46 = vpop.f32.mrf.mxu1  ;;  %v569_v55 = vrot.slane %v394_v43, 2 }
  0xad   :  { %v513_v48 = vrot.slane %v347_v46, 1  ;;  %v626_v56 = vrot.slane %v443_v44, 3 }
  0xaf   :  { %v514_v50 = vsel %vm511_vm0, %v512_v47, %v513_v48 }
  0xb0   :  { %v544_v51 = vadd.f32 %v514_v50, %v487_v45  ;;  %v306_v52 = vpop.f32.mrf.mxu0 }
  0xb3   :  { %v396_v53 = vpop.f32.mrf.mxu2 }
  0xb4   :  { %v445_v54 = vpop.f32.mrf.mxu3  ;;  %v570_v57 = vrot.slane %v396_v53, 2  ;;  %v350_v59 = vpop.f32.mrf.mxu1 }
  0xb5   :  { %v627_v58 = vrot.slane %v445_v54, 3  ;;  %v515_v8 = vrot.slane %v350_v59, 1 }
  0xb6   :  { %v571_v60 = vsel %vm568_vm1, %v569_v55, %v570_v57 }
  0xb7   :  { %v628_v61 = vsel %vm625_vm2, %v626_v56, %v627_v58  ;;  %v601_v62 = vadd.f32 %v571_v60, %v544_v51 }
  0xb8   :  { %v308_v0 = vpop.f32.mrf.mxu0 }
  0xb9   :  { %v658_v63 = vadd.f32 %v628_v61, %v601_v62  ;;  %v488_v5 = vadd.f32 %v1197_v41, %v308_v0 }
  0xbb   :  { %v666_v2 = vmax.f32 %v658_v63, 0.0  ;;  %v399_v3 = vpop.f32.mrf.mxu2 }
  0xbc   :  { %v448_v4 = vpop.f32.mrf.mxu3  ;;  %v352_v6 = vpop.f32.mrf.mxu1  ;;  %v572_v18 = vrot.slane %v399_v3, 2 }
  0xbd   :  { %v675_v7 = vmul.f32 %v1209_v1, %v666_v2  ;;  %v516_v9 = vrot.slane %v352_v6, 1  ;;  %v629_v19 = vrot.slane %v448_v4, 3 }
  0xbf   :  { %v683_v11 = vrot.slane %v675_v7, 4  ;;  %v517_v12 = vsel %vm511_vm0, %v515_v8, %v516_v9 }
  0xc0   :  { %v545_v13 = vadd.f32 %v517_v12, %v488_v5  ;;  %v310_v14 = vpop.f32.mrf.mxu0  ;;  %v1094_v12 = vld [vmem:[%s1284_s4 + $0x20] sm:$0xff] }
  0xc1   :  { %v684_v15 = vmax.f32 %v675_v7, %v683_v11  ;;  %842 = vmatpush.bf16.msrb.mxu0 %v1094_v12 }
  0xc3   :  { %v401_v16 = vpop.f32.mrf.mxu2  ;;  %v685_v25 = vrot.slane %v684_v15, 2 }
  0xc4   :  { %v450_v17 = vpop.f32.mrf.mxu3  ;;  %v573_v20 = vrot.slane %v401_v16, 2  ;;  %v355_v22 = vpop.f32.mrf.mxu1 }
  0xc5   :  { %v630_v21 = vrot.slane %v450_v17, 3  ;;  %v686_v29 = vmax.f32 %v684_v15, %v685_v25  ;;  %v518_v36 = vrot.slane %v355_v22, 1 }
  0xc6   :  { %v574_v23 = vsel %vm568_vm1, %v572_v18, %v573_v20 }
  0xc7   :  { %v631_v24 = vsel %vm625_vm2, %v629_v19, %v630_v21  ;;  %v602_v26 = vadd.f32 %v574_v23, %v545_v13  ;;  %v687_v39 = vrot.slane %v686_v29, 1 }
  0xc8   :  { %v312_v28 = vpop.f32.mrf.mxu0 }
  0xc9   :  { %v659_v27 = vadd.f32 %v631_v24, %v602_v26  ;;  %v489_v33 = vadd.f32 %v1197_v41, %v312_v28  ;;  %v688_v46 = vmax.f32 %v686_v29, %v687_v39  ;;  %v1093_v39 = vld [vmem:[%s1284_s4 + $0x18] sm:$0xff] }
  0xca   :  { %843 = vmatpush.bf16.msrb.mxu0 %v1093_v39 }
  0xcb   :  { %v667_v30 = vmax.f32 %v659_v27, 0.0  ;;  %v404_v31 = vpop.f32.mrf.mxu2  ;;  %v731_v60 = vpack.c.bf16 %v688_v46, %v688_v46 }
  0xcc   :  { %v453_v32 = vpop.f32.mrf.mxu3  ;;  %v357_v34 = vpop.f32.mrf.mxu1  ;;  %v575_v50 = vrot.slane %v404_v31, 2 }
  0xcd   :  { %v676_v35 = vmul.f32 %v1209_v1, %v667_v30  ;;  %v519_v37 = vrot.slane %v357_v34, 1  ;;  %v632_v51 = vrot.slane %v453_v32, 3  ;;  %v767_v5 = vunpack.c.l.b16 %v731_v60 }
  0xcf   :  { %v689_v40 = vrot.slane %v676_v35, 4  ;;  %v520_v42 = vsel %vm511_vm0, %v518_v36, %v519_v37 }
  0xd0   :  { %v546_v43 = vadd.f32 %v520_v42, %v489_v33  ;;  %v314_v45 = vpop.f32.mrf.mxu0 }
  0xd1   :  { %v690_v44 = vmax.f32 %v676_v35, %v689_v40 }
  0xd3   :  { %v691_v47 = vrot.slane %v690_v44, 2  ;;  %v406_v48 = vpop.f32.mrf.mxu2 }
  0xd4   :  { %v455_v49 = vpop.f32.mrf.mxu3  ;;  %v576_v52 = vrot.slane %v406_v48, 2  ;;  %v360_v54 = vpop.f32.mrf.mxu1 }
  0xd5   :  { %v633_v53 = vrot.slane %v455_v49, 3  ;;  %v692_v55 = vmax.f32 %v690_v44, %v691_v47  ;;  %v521_v10 = vrot.slane %v360_v54, 1  ;;  %v1092_v54 = vld [vmem:[%s1284_s4 + $0x10] sm:$0xff] }
  0xd6   :  { %v577_v56 = vsel %vm568_vm1, %v575_v50, %v576_v52  ;;  %844 = vmatpush.bf16.msrb.mxu0 %v1092_v54 }
  0xd7   :  { %v634_v57 = vsel %vm625_vm2, %v632_v51, %v633_v53  ;;  %v693_v58 = vrot.slane %v692_v55, 1  ;;  %v603_v59 = vadd.f32 %v577_v56, %v546_v43 }
  0xd8   :  { %v316_v63 = vpop.f32.mrf.mxu0 }
  0xd9   :  { %v694_v61 = vmax.f32 %v692_v55, %v693_v58  ;;  %v660_v62 = vadd.f32 %v634_v57, %v603_v59  ;;  %v490_v6 = vadd.f32 %v1197_v41, %v316_v63 }
  0xdb   :  { %v732_v0 = vpack.c.bf16 %v694_v61, %v694_v61  ;;  %v668_v2 = vmax.f32 %v660_v62, 0.0  ;;  %v409_v3 = vpop.f32.mrf.mxu2 }
  0xdc   :  { %v458_v4 = vpop.f32.mrf.mxu3  ;;  %v362_v7 = vpop.f32.mrf.mxu1  ;;  %v578_v22 = vrot.slane %v409_v3, 2 }
  0xdd   :  { %v768_v8 = vunpack.c.l.b16 %v732_v0  ;;  %v677_v9 = vmul.f32 %v1209_v1, %v668_v2  ;;  %v522_v11 = vrot.slane %v362_v7, 1  ;;  %v635_v27 = vrot.slane %v458_v4, 3 }
  0xdf   :  { %v695_v13 = vrot.slane %v677_v9, 4  ;;  %v523_v14 = vsel %vm511_vm0, %v521_v10, %v522_v11  ;;  %v776_v15 = vsel %vm775_vm3, %v768_v8, %v767_v5  ;;  %v1091_v8 = vld [vmem:[%s1284_s4 + $0x8] sm:$0xff] }
  0xe0   :  { %v547_v16 = vadd.f32 %v523_v14, %v490_v6  ;;  %v318_v18 = vpop.f32.mrf.mxu0  ;;  %845 = vmatpush.bf16.msrb.mxu0 %v1091_v8 }
  0xe1   :  { %v696_v17 = vmax.f32 %v677_v9, %v695_v13 }
  0xe3   :  { %v697_v19 = vrot.slane %v696_v17, 2  ;;  %v411_v20 = vpop.f32.mrf.mxu2 }
  0xe4   :  { %v460_v21 = vpop.f32.mrf.mxu3  ;;  %v579_v23 = vrot.slane %v411_v20, 2  ;;  %v365_v25 = vpop.f32.mrf.mxu1 }
  0xe5   :  { %v636_v24 = vrot.slane %v460_v21, 3  ;;  %v698_v26 = vmax.f32 %v696_v17, %v697_v19  ;;  %v524_v6 = vrot.slane %v365_v25, 1 }
  0xe6   :  { %v580_v28 = vsel %vm568_vm1, %v578_v22, %v579_v23 }
  0xe7   :  { %v699_v29 = vrot.slane %v698_v26, 1  ;;  %v604_v30 = vadd.f32 %v580_v28, %v547_v16  ;;  %v637_v31 = vsel %vm625_vm2, %v635_v27, %v636_v24 }
  0xe8   :  { %v320_v34 = vpop.f32.mrf.mxu0 }
  0xe9   :  { %v700_v32 = vmax.f32 %v698_v26, %v699_v29  ;;  %v661_v33 = vadd.f32 %v637_v31, %v604_v30  ;;  %v491_v9 = vadd.f32 %v1197_v41, %v320_v34 }
  0xeb   :  { %v733_v35 = vpack.c.bf16 %v700_v32, %v700_v32  ;;  %v669_v36 = vmax.f32 %v661_v33, 0.0  ;;  %v414_v37 = vpop.f32.mrf.mxu2 }
  0xec   :  { %v1235_v38 = vpop.f32.mrf.mxu3  ;;  %v367_v40 = vpop.f32.mrf.mxu1  ;;  %v581_v12 = vrot.slane %v414_v37, 2 }
  0xed   :  { %v769_v42 = vunpack.c.l.b16 %v733_v35  ;;  %v678_v43 = vmul.f32 %v1209_v1, %v669_v36  ;;  %v525_v0 = vrot.slane %v367_v40, 1  ;;  %v638_v28 = vrot.slane %v1235_v38, 3  ;;  %v1090_v38 = vld [vmem:[%s1284_s4] sm:$0xff] }
  0xee   :  { %846 = vmatpush.bf16.msrb.mxu0 %v1090_v38 }
  0xef   :  { %v701_v44 = vrot.slane %v678_v43, 4  ;;  %v778_v45 = vsel %vm777_vm4, %v769_v42, %v776_v15  ;;  %v526_v13 = vsel %vm511_vm0, %v524_v6, %v525_v0 }
  0xf0   :  { %v322_v47 = vpop.f32.mrf.mxu0  ;;  %v548_v19 = vadd.f32 %v526_v13, %v491_v9 }
  0xf1   :  { %v702_v46 = vmax.f32 %v678_v43, %v701_v44 }
  0xf3   :  { %v703_v48 = vrot.slane %v702_v46, 2  ;;  %v416_v49 = vpop.f32.mrf.mxu2 }
  0xf4   :  { %v465_v50 = vpop.f32.mrf.mxu3  ;;  %v370_v51 = vpop.f32.mrf.mxu1  ;;  %v582_v7 = vrot.slane %v416_v49, 2 }
  0xf5   :  { %v704_v52 = vmax.f32 %v702_v46, %v703_v48  ;;  %v527_v10 = vrot.slane %v370_v51, 1  ;;  %v639_v21 = vrot.slane %v465_v50, 3 }
  0xf6   :  { %v583_v17 = vsel %vm568_vm1, %v581_v12, %v582_v7 }
  0xf7   :  { %v705_v53 = vrot.slane %v704_v52, 1  ;;  %v605_v25 = vadd.f32 %v583_v17, %v548_v19  ;;  %v640_v32 = vsel %vm625_vm2, %v638_v28, %v639_v21 }
  0xf8   :  { %v324_v56 = vpop.f32.mrf.mxu0 }
  0xf9   :  { %v706_v55 = vmax.f32 %v704_v52, %v705_v53  ;;  %v492_v14 = vadd.f32 %v1197_v41, %v324_v56  ;;  %v662_v33 = vadd.f32 %v640_v32, %v605_v25 }
  0xfb   :  { %v734_v57 = vpack.c.bf16 %v706_v55, %v706_v55  ;;  %v419_v58 = vpop.f32.mrf.mxu2  ;;  %v670_v44 = vmax.f32 %v662_v33, 0.0 }
  0xfc   :  { %v468_v59 = vpop.f32.mrf.mxu3  ;;  %v372_v60 = vpop.f32.mrf.mxu1  ;;  %v584_v15 = vrot.slane %v419_v58, 2 }
  0xfd   :  { %v770_v61 = vunpack.c.l.b16 %v734_v57  ;;  %v528_v4 = vrot.slane %v372_v60, 1  ;;  %v641_v30 = vrot.slane %v468_v59, 3  ;;  %v679_v54 = vmul.f32 %v1209_v1, %v670_v44 }
  0xff   :  { %v1244_v62 = vsel %vm779_vm5, %v770_v61, %v778_v45  ;;  %v529_v16 = vsel %vm511_vm0, %v527_v10, %v528_v4 }
 0x100   :  { %v326_v63 = vpop.f32.mrf.mxu0  ;;  %v549_v22 = vadd.f32 %v529_v16, %v492_v14 }
 0x101   :  { %v707_v63 = vrot.slane %v679_v54, 4 }
 0x103   :  { %v421_v2 = vpop.f32.mrf.mxu2  ;;  %v708_v6 = vmax.f32 %v679_v54, %v707_v63 }
 0x104   :  { %v470_v3 = vpop.f32.mrf.mxu3  ;;  %v375_v5 = vpop.f32.mrf.mxu1  ;;  %v585_v11 = vrot.slane %v421_v2, 2 }
 0x105   :  { %v642_v26 = vrot.slane %v470_v3, 3  ;;  %v530_v35 = vrot.slane %v375_v5, 1 }
 0x106   :  { %v586_v20 = vsel %vm568_vm1, %v584_v15, %v585_v11  ;;  %v709_v15 = vrot.slane %v708_v6, 2 }
 0x107   :  { %v606_v29 = vadd.f32 %v586_v20, %v549_v22  ;;  %v643_v34 = vsel %vm625_vm2, %v641_v30, %v642_v26 }
 0x108   :  { %v328_v18 = vpop.f32.mrf.mxu0  ;;  %v710_v25 = vmax.f32 %v708_v6, %v709_v15 }
 0x109   :  { %v663_v36 = vadd.f32 %v643_v34, %v606_v29  ;;  %v493_v37 = vadd.f32 %v1197_v41, %v328_v18 }
 0x10a   :  { %v711_v30 = vrot.slane %v710_v25, 1 }
 0x10b   :  { %v424_v23 = vpop.f32.mrf.mxu2  ;;  %v671_v49 = vmax.f32 %v663_v36, 0.0 }
 0x10c   :  { %v473_v24 = vpop.f32.mrf.mxu3  ;;  %v377_v27 = vpop.f32.mrf.mxu1  ;;  %v587_v45 = vrot.slane %v424_v23, 2 }
 0x10d   :  { %v531_v31 = vrot.slane %v377_v27, 1  ;;  %v644_v51 = vrot.slane %v473_v24, 3  ;;  %v680_v56 = vmul.f32 %v1209_v1, %v671_v49 }
 0x10f   :  { %v532_v40 = vsel %vm511_vm0, %v530_v35, %v531_v31  ;;  %v713_v2 = vrot.slane %v680_v56, 4  ;;  %v712_v35 = vmax.f32 %v710_v25, %v711_v30 }
 0x110   :  { %v330_v39 = vpop.f32.mrf.mxu0  ;;  %v550_v50 = vadd.f32 %v532_v40, %v493_v37 }
 0x111   :  { %v714_v8 = vmax.f32 %v680_v56, %v713_v2  ;;  %v1102_v56 = vld [vmem:[%s1285_s5] ss:$0 sm:$0xff] }
 0x113   :  { %v426_v42 = vpop.f32.mrf.mxu2  ;;  %v715_v19 = vrot.slane %v714_v8, 2 }
 0x114   :  { %v475_v43 = vpop.f32.mrf.mxu3  ;;  %v588_v46 = vrot.slane %v426_v42, 2  ;;  %v380_v48 = vpop.f32.mrf.mxu1  ;;  %v735_v42 = vpack.c.bf16 %v712_v35, %v712_v35 }
 0x115   :  { %v645_v47 = vrot.slane %v475_v43, 3  ;;  %v533_v7 = vrot.slane %v380_v48, 1  ;;  %v716_v26 = vmax.f32 %v714_v8, %v715_v19 }
 0x116   :  { %v589_v52 = vsel %vm568_vm1, %v587_v45, %v588_v46  ;;  %v771_v46 = vunpack.c.l.b16 %v735_v42 }
 0x117   :  { %v607_v53 = vadd.f32 %v589_v52, %v550_v50  ;;  %v646_v55 = vsel %vm625_vm2, %v644_v51, %v645_v47  ;;  %v717_v31 = vrot.slane %v716_v26, 1 }
 0x118   :  { %v332_v58 = vpop.f32.mrf.mxu0 }
 0x119   :  { %v664_v57 = vadd.f32 %v646_v55, %v607_v53  ;;  %v494_v9 = vadd.f32 %v1197_v41, %v332_v58  ;;  %v718_v37 = vmax.f32 %v716_v26, %v717_v31 }
 0x11b   :  { %v672_v59 = vmax.f32 %v664_v57, 0.0  ;;  %v429_v60 = vpop.f32.mrf.mxu2  ;;  %v736_v38 = vpack.c.bf16 %v718_v37, %v718_v37 }
 0x11c   :  { %v478_v61 = vpop.f32.mrf.mxu3  ;;  %v382_v0 = vpop.f32.mrf.mxu1  ;;  %v590_v16 = vrot.slane %v429_v60, 2 }
 0x11d   :  { %v681_v3 = vmul.f32 %v1209_v1, %v672_v59  ;;  %v534_v4 = vrot.slane %v382_v0, 1  ;;  %v647_v22 = vrot.slane %v478_v61, 3  ;;  %v772_v48 = vunpack.c.l.b16 %v736_v38 }
 0x11f   :  { %v719_v5 = vrot.slane %v681_v3, 4  ;;  %v535_v12 = vsel %vm511_vm0, %v533_v7, %v534_v4 }
 0x120   :  { %v334_v10 = vpop.f32.mrf.mxu0  ;;  %v551_v20 = vadd.f32 %v535_v12, %v494_v9 }
 0x121   :  { %v720_v11 = vmax.f32 %v681_v3, %v719_v5 }
 0x123   :  { %v431_v13 = vpop.f32.mrf.mxu2  ;;  %v721_v21 = vrot.slane %v720_v11, 2 }
 0x124   :  { %v480_v14 = vpop.f32.mrf.mxu3  ;;  %v591_v17 = vrot.slane %v431_v13, 2 }
 0x125   :  { %v648_v18 = vrot.slane %v480_v14, 3  ;;  %v722_v28 = vmax.f32 %v720_v11, %v721_v21 }
 0x126   :  { %v592_v23 = vsel %vm568_vm1, %v590_v16, %v591_v17 }
 0x127   :  { %v608_v24 = vadd.f32 %v592_v23, %v551_v20  ;;  %v649_v41 = vsel %vm625_vm2, %v647_v22, %v648_v18  ;;  %v723_v33 = vrot.slane %v722_v28, 1 }
 0x129   :  { %v665_v27 = vadd.f32 %v649_v41, %v608_v24  ;;  %v724_v39 = vmax.f32 %v722_v28, %v723_v33 }
 0x12b   :  { %v673_v29 = vmax.f32 %v665_v27, 0.0  ;;  %v737_v44 = vpack.c.bf16 %v724_v39, %v724_v39 }
 0x12d   :  { %v682_v32 = vmul.f32 %v1209_v1, %v673_v29  ;;  %v773_v49 = vunpack.c.l.b16 %v737_v44  ;;  %v782_v1 = vsel %vm781_vm6, %v771_v46, %v1244_v62 }
 0x12e   :  { %v784_v52 = vsel %vm783_vm7, %v772_v48, %v782_v1 }
 0x12f   :  { %v725_v34 = vrot.slane %v682_v32, 4  ;;  %v786_v53 = vsel %vm785_vm8, %v773_v49, %v784_v52 }
 0x131   :  { %v726_v36 = vmax.f32 %v682_v32, %v725_v34 }
 0x133   :  { %v727_v40 = vrot.slane %v726_v36, 2 }
 0x135   :  { %v728_v43 = vmax.f32 %v726_v36, %v727_v40 }
 0x137   :  { %v729_v45 = vrot.slane %v728_v43, 1 }
 0x139   :  { %v730_v47 = vmax.f32 %v728_v43, %v729_v45 }
 0x13b   :  { %v738_v50 = vpack.c.bf16 %v730_v47, %v730_v47 }
 0x13d   :  { %v774_v51 = vunpack.c.l.b16 %v738_v50 }
 0x13f   :  { %v788_v54 = vsel %vm787_vm9, %v774_v51, %v786_v53 }
 0x140   :  { %v789_v55 = vpack.c.b16 %v788_v54, %v788_v54 }
 0x142   :  { %847 = vmatmul.bf16.vlgmr.msrb.gmra.mxu0 %v789_v55 }
 0x1bf   :  { %v848_v57 = vpop.f32.mrf.mxu0 }
 0x1c0   :  { %v849_v58 = vadd.f32 %v1102_v56, %v848_v57 }
 0x1c2   :  { %852 = vst [vmem:[%s1286_s6] sm:$0xff] %v849_v58 }
 0x1c7   :  { %v850_v59 = vpop.f32.mrf.mxu0 }
 0x1c8   :  { %857 = vsyncpa [#allocation3], 1 }

// kernel: fused_textcnn.1
= control target key start
LH: loop header
LB: loop body
LE: loop exit
PB: predicated region body
PF: predicated region fallthrough
CT: control target
= control target key end

     0   :  { %11 = vsyncpa [#allocation3], 0  ;;  %s1129_s24 = smov [#allocation2]   ;;  %s1130_s26 = smov 256   ;;  %s1280_s0 = inlined_call_operand.vmem [shape: bf16[8,16,128], index: 0, kind: input, shape index: {}]   ;;  %s1281_s1 = inlined_call_operand.hbm [shape: bf16[128,512], index: 1, kind: input, shape index: {}]   ;;  %s1282_s2 = inlined_call_operand.vmem [shape: f32[1,128], index: 2, kind: input, shape index: {}]   ;;  %s1283_s3 = inlined_call_operand.vmem [shape: f32[8,128], index: 3, kind: input, shape index: {}]   ;;  %s1284_s4 = inlined_call_operand.vmem [shape: bf16[128,128], index: 4, kind: input, shape index: {}]   ;;  %s1285_s5 = inlined_call_operand.vmem [shape: f32[1,128], index: 5, kind: input, shape index: {}]   ;;  %s1286_s6 = inlined_call_operand.vmem [shape: f32[8,128], index: 6, kind: output, shape index: {}]  }
   0x1   :  { %s18_s23 = sshll.u32 %s1281_s1, 4  ;;  %s20_s25 = sshll.u32 %s1129_s24, 4  ;;  %s19_s23 = int_to_ptr.hbm [resolvable:$true] %s18_s23  ;;  %s21_s25 = int_to_ptr.vmem [resolvable:$true] %s20_s25 }
   0x2   :  { %s1131_s27 = smov 16  }
   0x3   :  { %26 = dma.hbm_to_vmem [thread:$0]  %s19_s23, 4096, %s21_s25, [#allocation3], %s1130_s26, %s1130_s26, %s1131_s27  }
   0x4   :  { %1127 = dma.done.wait [#allocation3], 4096  }
   0x5   :  { %1128 = vsyncadd [#allocation3], 4294963200  ;;  %v1086_v0 = vld [vmem:[#allocation2 + $0xe4] sm:$0xf]  ;;  %v1006_v1 = vld [vmem:[#allocation2 + $0xf0] sm:$0xf0] }
   0x6   :  { %v1012_v2 = vld [vmem:[#allocation2 + $0xe8] sm:$0xf]  ;;  %v1009_v3 = vor.u32 %v1086_v0, %v1006_v1  ;;  %v1089_v4 = vld [vmem:[#allocation2 + $0xf4] sm:$0xf0]  ;;  %v1087_v5 = vld [vmem:[#allocation2 + $0xec] sm:$0xf] }
   0x7   :  { %v1014_v6 = vld [vmem:[#allocation2 + $0xf8] sm:$0xf0]  ;;  %v1013_v7 = vor.u32 %v1089_v4, %v1012_v2  ;;  %v1082_v9 = vld [vmem:[#allocation2 + $0xc4] sm:$0xf]  ;;  %v990_v10 = vld [vmem:[#allocation2 + $0xd0] sm:$0xf0] }
   0x8   :  { %v1017_v8 = vor.u32 %v1087_v5, %v1014_v6  ;;  %v996_v11 = vld [vmem:[#allocation2 + $0xc8] sm:$0xf]  ;;  %336 = vmatpush.bf16.msra.mxu1 %v1009_v3  ;;  %v993_v12 = vor.u32 %v1082_v9, %v990_v10  ;;  %v1085_v13 = vld [vmem:[#allocation2 + $0xd4] sm:$0xf0]  ;;  %v1083_v14 = vld [vmem:[#allocation2 + $0xcc] sm:$0xf] }
   0x9   :  { %v998_v15 = vld [vmem:[#allocation2 + $0xd8] sm:$0xf0]  ;;  %385 = vmatpush.bf16.msra.mxu2 %v1013_v7  ;;  %v997_v16 = vor.u32 %v1085_v13, %v996_v11  ;;  %v1004_v18 = vld [vmem:[#allocation2 + $0xe0] sm:$0xf]  ;;  %v1088_v19 = vld [vmem:[#allocation2 + $0xec] sm:$0xf0] }
   0xa   :  { %434 = vmatpush.bf16.msra.mxu3 %v1017_v8  ;;  %v1001_v17 = vor.u32 %v1083_v14, %v998_v15  ;;  %v1078_v20 = vld [vmem:[#allocation2 + $0xa4] sm:$0xf]  ;;  %v1005_v21 = vor.u32 %v1088_v19, %v1004_v18  ;;  %v974_v22 = vld [vmem:[#allocation2 + $0xb0] sm:$0xf0]  ;;  %v980_v23 = vld [vmem:[#allocation2 + $0xa8] sm:$0xf] }
   0xb   :  { %v1081_v24 = vld [vmem:[#allocation2 + $0xb4] sm:$0xf0]  ;;  %v1079_v25 = vld [vmem:[#allocation2 + $0xac] sm:$0xf]  ;;  %v982_v26 = vld [vmem:[#allocation2 + $0xb8] sm:$0xf0]  ;;  %v977_v28 = vor.u32 %v1078_v20, %v974_v22 }
   0xc   :  { %v988_v27 = vld [vmem:[#allocation2 + $0xc0] sm:$0xf]  ;;  %337 = vmatpush.bf16.msra.mxu1 %v993_v12  ;;  %295 = vmatpush.bf16.msra.mxu0 %v1005_v21  ;;  %v1084_v29 = vld [vmem:[#allocation2 + $0xcc] sm:$0xf0]  ;;  %v1074_v30 = vld [vmem:[#allocation2 + $0x84] sm:$0xf]  ;;  %v981_v32 = vor.u32 %v1081_v24, %v980_v23  ;;  %v985_v33 = vor.u32 %v1079_v25, %v982_v26 }
   0xd   :  { %v958_v31 = vld [vmem:[#allocation2 + $0x90] sm:$0xf0]  ;;  %386 = vmatpush.bf16.msra.mxu2 %v997_v16  ;;  %v989_v34 = vor.u32 %v1084_v29, %v988_v27  ;;  %v964_v35 = vld [vmem:[#allocation2 + $0x88] sm:$0xf]  ;;  %v1077_v36 = vld [vmem:[#allocation2 + $0x94] sm:$0xf0] }
   0xe   :  { %435 = vmatpush.bf16.msra.mxu3 %v1001_v17  ;;  %v1075_v37 = vld [vmem:[#allocation2 + $0x8c] sm:$0xf]  ;;  %v966_v38 = vld [vmem:[#allocation2 + $0x98] sm:$0xf0]  ;;  %v972_v39 = vld [vmem:[#allocation2 + $0xa0] sm:$0xf]  ;;  %v961_v41 = vor.u32 %v1074_v30, %v958_v31  ;;  %v965_v45 = vor.u32 %v1077_v36, %v964_v35 }
   0xf   :  { %v1080_v40 = vld [vmem:[#allocation2 + $0xac] sm:$0xf0]  ;;  %v1070_v43 = vld [vmem:[#allocation2 + $0x64] sm:$0xf]  ;;  %v942_v44 = vld [vmem:[#allocation2 + $0x70] sm:$0xf0]  ;;  %v969_v46 = vor.u32 %v1075_v37, %v966_v38 }
  0x10   :  { %338 = vmatpush.bf16.msra.mxu1 %v977_v28  ;;  %296 = vmatpush.bf16.msra.mxu0 %v989_v34  ;;  %v973_v42 = vor.u32 %v1080_v40, %v972_v39  ;;  %v948_v47 = vld [vmem:[#allocation2 + $0x68] sm:$0xf]  ;;  %v956_v48 = vld [vmem:[#allocation2 + $0x80] sm:$0xf]  ;;  %v1076_v49 = vld [vmem:[#allocation2 + $0x8c] sm:$0xf0]  ;;  %v945_v53 = vor.u32 %v1070_v43, %v942_v44 }
  0x11   :  { %387 = vmatpush.bf16.msra.mxu2 %v981_v32  ;;  %v1073_v50 = vld [vmem:[#allocation2 + $0x74] sm:$0xf0]  ;;  %v1071_v51 = vld [vmem:[#allocation2 + $0x6c] sm:$0xf]  ;;  %v950_v52 = vld [vmem:[#allocation2 + $0x78] sm:$0xf0]  ;;  %v957_v54 = vor.u32 %v1076_v49, %v956_v48 }
  0x12   :  { %436 = vmatpush.bf16.msra.mxu3 %v985_v33  ;;  %v1066_v55 = vld [vmem:[#allocation2 + $0x44] sm:$0xf]  ;;  %v926_v56 = vld [vmem:[#allocation2 + $0x50] sm:$0xf0]  ;;  %v949_v57 = vor.u32 %v1073_v50, %v948_v47  ;;  %v953_v58 = vor.u32 %v1071_v51, %v950_v52  ;;  %v932_v59 = vld [vmem:[#allocation2 + $0x48] sm:$0xf] }
  0x13   :  { %v940_v60 = vld [vmem:[#allocation2 + $0x60] sm:$0xf]  ;;  %v1072_v61 = vld [vmem:[#allocation2 + $0x6c] sm:$0xf0]  ;;  %v1069_v62 = vld [vmem:[#allocation2 + $0x54] sm:$0xf0]  ;;  %v929_v1 = vor.u32 %v1066_v55, %v926_v56 }
  0x14   :  { %339 = vmatpush.bf16.msra.mxu1 %v961_v41  ;;  %297 = vmatpush.bf16.msra.mxu0 %v973_v42  ;;  %v1067_v63 = vld [vmem:[#allocation2 + $0x4c] sm:$0xf]  ;;  %v934_v0 = vld [vmem:[#allocation2 + $0x58] sm:$0xf0]  ;;  %v941_v2 = vor.u32 %v1072_v61, %v940_v60  ;;  %v1062_v3 = vld [vmem:[#allocation2 + $0x24] sm:$0xf]  ;;  %v933_v5 = vor.u32 %v1069_v62, %v932_v59 }
  0x15   :  { %388 = vmatpush.bf16.msra.mxu2 %v965_v45  ;;  %v910_v4 = vld [vmem:[#allocation2 + $0x30] sm:$0xf0]  ;;  %v937_v6 = vor.u32 %v1067_v63, %v934_v0  ;;  %v916_v7 = vld [vmem:[#allocation2 + $0x28] sm:$0xf]  ;;  %v924_v8 = vld [vmem:[#allocation2 + $0x40] sm:$0xf] }
  0x16   :  { %437 = vmatpush.bf16.msra.mxu3 %v969_v46  ;;  %v1068_v9 = vld [vmem:[#allocation2 + $0x4c] sm:$0xf0]  ;;  %v1065_v10 = vld [vmem:[#allocation2 + $0x34] sm:$0xf0]  ;;  %v1063_v11 = vld [vmem:[#allocation2 + $0x2c] sm:$0xf]  ;;  %v913_v13 = vor.u32 %v1062_v3, %v910_v4 }
  0x17   :  { %v918_v12 = vld [vmem:[#allocation2 + $0x38] sm:$0xf0]  ;;  %v925_v14 = vor.u32 %v1068_v9, %v924_v8  ;;  %v1058_v15 = vld [vmem:[#allocation2 + $0x4] sm:$0xf]  ;;  %v894_v16 = vld [vmem:[#allocation2 + $0x10] sm:$0xf0]  ;;  %v917_v17 = vor.u32 %v1065_v10, %v916_v7 }
  0x18   :  { %340 = vmatpush.bf16.msra.mxu1 %v945_v53  ;;  %298 = vmatpush.bf16.msra.mxu0 %v957_v54  ;;  %v921_v18 = vor.u32 %v1063_v11, %v918_v12  ;;  %v900_v19 = vld [vmem:[#allocation2 + $0x8] sm:$0xf]  ;;  %v908_v20 = vld [vmem:[#allocation2 + $0x20] sm:$0xf]  ;;  %v1064_v21 = vld [vmem:[#allocation2 + $0x2c] sm:$0xf0]  ;;  %v897_v25 = vor.u32 %v1058_v15, %v894_v16 }
  0x19   :  { %389 = vmatpush.bf16.msra.mxu2 %v949_v57  ;;  %v1061_v22 = vld [vmem:[#allocation2 + $0x14] sm:$0xf0]  ;;  %v1059_v23 = vld [vmem:[#allocation2 + $0xc] sm:$0xf]  ;;  %v902_v24 = vld [vmem:[#allocation2 + $0x18] sm:$0xf0]  ;;  %v909_v26 = vor.u32 %v1064_v21, %v908_v20 }
  0x1a   :  { %438 = vmatpush.bf16.msra.mxu3 %v953_v58  ;;  %v901_v27 = vor.u32 %v1061_v22, %v900_v19  ;;  %v905_v28 = vor.u32 %v1059_v23, %v902_v24  ;;  %v892_v29 = vld [vmem:[#allocation2] sm:$0xf]  ;;  %v1060_v30 = vld [vmem:[#allocation2 + $0xc] sm:$0xf0]  ;;  %v1051_v33 = vld [vmem:[%s1280_s0 + $0x8] sm:$0xff]  ;;  %vm511_vm0 = vcmask 1046528  }
  0x1b   :  { %v1050_v31 = vld [vmem:[%s1280_s0] sm:$0xff]  ;;  %v893_v32 = vor.u32 %v1060_v30, %v892_v29  ;;  %v1052_v34 = vld [vmem:[%s1280_s0 + $0x10] sm:$0xff]  ;;  %v1053_v35 = vld [vmem:[%s1280_s0 + $0x18] sm:$0xff]  ;;  %vm568_vm1 = vcmask 1045504   ;;  %vm625_vm2 = vcmask 1044480   ;;  %vm775_vm3 = vcmask 1041409  }
  0x1c   :  { %341 = vmatpush.bf16.msra.mxu1 %v929_v1  ;;  %299 = vmatpush.bf16.msra.mxu0 %v941_v2  ;;  %v1054_v36 = vld [vmem:[%s1280_s0 + $0x20] sm:$0xff]  ;;  %v1055_v37 = vld [vmem:[%s1280_s0 + $0x28] sm:$0xff]  ;;  %v1056_v38 = vld [vmem:[%s1280_s0 + $0x30] sm:$0xff]  ;;  %vm777_vm4 = vcmask 1042434   ;;  %vm779_vm5 = vcmask 1043459   ;;  %vm781_vm6 = vcmask 1044484  }
  0x1d   :  { %390 = vmatpush.bf16.msra.mxu2 %v933_v5  ;;  %v1057_v39 = vld [vmem:[%s1280_s0 + $0x38] sm:$0xff]  ;;  %v1197_v41 = vld [vmem:[%s1282_s2] ss:$0 sm:$0xff]  ;;  %v1096_v10 = vld [vmem:[%s1284_s4 + $0x30] sm:$0xff]  ;;  %vm783_vm7 = vcmask 1045509   ;;  %vm785_vm8 = vcmask 1046534  }
  0x1e   :  { %439 = vmatpush.bf16.msra.mxu3 %v937_v6  ;;  %v1097_v49 = vld [vmem:[%s1284_s4 + $0x38] sm:$0xff]  ;;  %v1209_v1 = vld [vmem:[%s1283_s3] sm:$0xff]  ;;  %vm787_vm9 = vcmask 1047559  }
  0x20   :  { %342 = vmatpush.bf16.msra.mxu1 %v913_v13  ;;  %300 = vmatpush.bf16.msra.mxu0 %v925_v14 }
  0x21   :  { %391 = vmatpush.bf16.msra.mxu2 %v917_v17 }
  0x22   :  { %440 = vmatpush.bf16.msra.mxu3 %v921_v18 }
  0x24   :  { %343 = vmatpush.bf16.msra.mxu1 %v897_v25  ;;  %301 = vmatpush.bf16.msra.mxu0 %v909_v26 }
  0x25   :  { %392 = vmatpush.bf16.msra.mxu2 %v901_v27 }
  0x26   :  { %441 = vmatpush.bf16.msra.mxu3 %v905_v28 }
  0x27   :  { %344 = vmatmul.bf16.vlgmr.msra.gmra.mxu1 %v1050_v31 }
  0x28   :  { %393 = vmatmul.bf16.vlgmr.msra.gmra.mxu2 %v1050_v31  ;;  %302 = vmatpush.bf16.msra.mxu0 %v893_v32 }
  0x29   :  { %442 = vmatmul.bf16.vlgmr.msra.gmra.mxu3 %v1050_v31 }
  0x2b   :  { %303 = vmatmul.bf16.vlgmr.msra.gmra.mxu0 %v1050_v31 }
  0x2c   :  { %839 = vmatpush.bf16.msrb.mxu0 %v1097_v49 }
  0x30   :  { %840 = vmatpush.bf16.msrb.mxu0 %v1096_v10 }
  0x37   :  { %349 = vmatmul.bf16.gmra.mxu1 %v1051_v33 }
  0x38   :  { %398 = vmatmul.bf16.gmra.mxu2 %v1051_v33 }
  0x39   :  { %447 = vmatmul.bf16.gmra.mxu3 %v1051_v33 }
  0x3b   :  { %307 = vmatmul.bf16.gmra.mxu0 %v1051_v33 }
  0x47   :  { %354 = vmatmul.bf16.gmra.mxu1 %v1052_v34 }
  0x48   :  { %403 = vmatmul.bf16.gmra.mxu2 %v1052_v34 }
  0x49   :  { %452 = vmatmul.bf16.gmra.mxu3 %v1052_v34 }
  0x4b   :  { %311 = vmatmul.bf16.gmra.mxu0 %v1052_v34 }
  0x57   :  { %359 = vmatmul.bf16.gmra.mxu1 %v1053_v35 }
  0x58   :  { %408 = vmatmul.bf16.gmra.mxu2 %v1053_v35 }
  0x59   :  { %457 = vmatmul.bf16.gmra.mxu3 %v1053_v35 }
  0x5b   :  { %315 = vmatmul.bf16.gmra.mxu0 %v1053_v35 }
  0x67   :  { %364 = vmatmul.bf16.gmra.mxu1 %v1054_v36 }
  0x68   :  { %413 = vmatmul.bf16.gmra.mxu2 %v1054_v36 }
  0x69   :  { %462 = vmatmul.bf16.gmra.mxu3 %v1054_v36 }
  0x6b   :  { %319 = vmatmul.bf16.gmra.mxu0 %v1054_v36 }
  0x77   :  { %369 = vmatmul.bf16.gmra.mxu1 %v1055_v37 }
  0x78   :  { %418 = vmatmul.bf16.gmra.mxu2 %v1055_v37 }
  0x79   :  { %467 = vmatmul.bf16.gmra.mxu3 %v1055_v37 }
  0x7b   :  { %323 = vmatmul.bf16.gmra.mxu0 %v1055_v37 }
  0x87   :  { %374 = vmatmul.bf16.gmra.mxu1 %v1056_v38 }
  0x88   :  { %423 = vmatmul.bf16.gmra.mxu2 %v1056_v38 }
  0x89   :  { %472 = vmatmul.bf16.gmra.mxu3 %v1056_v38 }
  0x8b   :  { %327 = vmatmul.bf16.gmra.mxu0 %v1056_v38  ;;  %v1095_v38 = vld [vmem:[%s1284_s4 + $0x28] sm:$0xff] }
  0x8c   :  { %841 = vmatpush.bf16.msrb.mxu0 %v1095_v38 }
  0x97   :  { %379 = vmatmul.bf16.gmra.mxu1 %v1057_v39 }
  0x98   :  { %428 = vmatmul.bf16.gmra.mxu2 %v1057_v39 }
  0x99   :  { %477 = vmatmul.bf16.gmra.mxu3 %v1057_v39 }
  0x9b   :  { %331 = vmatmul.bf16.gmra.mxu0 %v1057_v39 }
  0xa4   :  { %v345_v40 = vpop.f32.mrf.mxu1 }
  0xa5   :  { %v512_v47 = vrot.slane %v345_v40, 1 }
  0xa8   :  { %v304_v42 = vpop.f32.mrf.mxu0 }
  0xa9   :  { %v487_v45 = vadd.f32 %v1197_v41, %v304_v42 }
  0xab   :  { %v394_v43 = vpop.f32.mrf.mxu2 }
  0xac   :  { %v443_v44 = vpop.f32.mrf.mxu3  ;;  %v347_v46 = vpop.f32.mrf.mxu1  ;;  %v569_v55 = vrot.slane %v394_v43, 2 }
  0xad   :  { %v513_v48 = vrot.slane %v347_v46, 1  ;;  %v626_v56 = vrot.slane %v443_v44, 3 }
  0xaf   :  { %v514_v50 = vsel %vm511_vm0, %v512_v47, %v513_v48 }
  0xb0   :  { %v544_v51 = vadd.f32 %v514_v50, %v487_v45  ;;  %v306_v52 = vpop.f32.mrf.mxu0 }
  0xb3   :  { %v396_v53 = vpop.f32.mrf.mxu2 }
  0xb4   :  { %v445_v54 = vpop.f32.mrf.mxu3  ;;  %v570_v57 = vrot.slane %v396_v53, 2  ;;  %v350_v59 = vpop.f32.mrf.mxu1 }
  0xb5   :  { %v627_v58 = vrot.slane %v445_v54, 3  ;;  %v515_v8 = vrot.slane %v350_v59, 1 }
  0xb6   :  { %v571_v60 = vsel %vm568_vm1, %v569_v55, %v570_v57 }
  0xb7   :  { %v628_v61 = vsel %vm625_vm2, %v626_v56, %v627_v58  ;;  %v601_v62 = vadd.f32 %v571_v60, %v544_v51 }
  0xb8   :  { %v308_v0 = vpop.f32.mrf.mxu0 }
  0xb9   :  { %v658_v63 = vadd.f32 %v628_v61, %v601_v62  ;;  %v488_v5 = vadd.f32 %v1197_v41, %v308_v0 }
  0xbb   :  { %v666_v2 = vmax.f32 %v658_v63, 0.0  ;;  %v399_v3 = vpop.f32.mrf.mxu2 }
  0xbc   :  { %v448_v4 = vpop.f32.mrf.mxu3  ;;  %v352_v6 = vpop.f32.mrf.mxu1  ;;  %v572_v18 = vrot.slane %v399_v3, 2 }
  0xbd   :  { %v675_v7 = vmul.f32 %v1209_v1, %v666_v2  ;;  %v516_v9 = vrot.slane %v352_v6, 1  ;;  %v629_v19 = vrot.slane %v448_v4, 3 }
  0xbf   :  { %v683_v11 = vrot.slane %v675_v7, 4  ;;  %v517_v12 = vsel %vm511_vm0, %v515_v8, %v516_v9 }
  0xc0   :  { %v545_v13 = vadd.f32 %v517_v12, %v488_v5  ;;  %v310_v14 = vpop.f32.mrf.mxu0  ;;  %v1094_v12 = vld [vmem:[%s1284_s4 + $0x20] sm:$0xff] }
  0xc1   :  { %v684_v15 = vmax.f32 %v675_v7, %v683_v11  ;;  %842 = vmatpush.bf16.msrb.mxu0 %v1094_v12 }
  0xc3   :  { %v401_v16 = vpop.f32.mrf.mxu2  ;;  %v685_v25 = vrot.slane %v684_v15, 2 }
  0xc4   :  { %v450_v17 = vpop.f32.mrf.mxu3  ;;  %v573_v20 = vrot.slane %v401_v16, 2  ;;  %v355_v22 = vpop.f32.mrf.mxu1 }
  0xc5   :  { %v630_v21 = vrot.slane %v450_v17, 3  ;;  %v686_v29 = vmax.f32 %v684_v15, %v685_v25  ;;  %v518_v36 = vrot.slane %v355_v22, 1 }
  0xc6   :  { %v574_v23 = vsel %vm568_vm1, %v572_v18, %v573_v20 }
  0xc7   :  { %v631_v24 = vsel %vm625_vm2, %v629_v19, %v630_v21  ;;  %v602_v26 = vadd.f32 %v574_v23, %v545_v13  ;;  %v687_v39 = vrot.slane %v686_v29, 1 }
  0xc8   :  { %v312_v28 = vpop.f32.mrf.mxu0 }
  0xc9   :  { %v659_v27 = vadd.f32 %v631_v24, %v602_v26  ;;  %v489_v33 = vadd.f32 %v1197_v41, %v312_v28  ;;  %v688_v46 = vmax.f32 %v686_v29, %v687_v39  ;;  %v1093_v39 = vld [vmem:[%s1284_s4 + $0x18] sm:$0xff] }
  0xca   :  { %843 = vmatpush.bf16.msrb.mxu0 %v1093_v39 }
  0xcb   :  { %v667_v30 = vmax.f32 %v659_v27, 0.0  ;;  %v404_v31 = vpop.f32.mrf.mxu2  ;;  %v731_v60 = vpack.c.bf16 %v688_v46, %v688_v46 }
  0xcc   :  { %v453_v32 = vpop.f32.mrf.mxu3  ;;  %v357_v34 = vpop.f32.mrf.mxu1  ;;  %v575_v50 = vrot.slane %v404_v31, 2 }
  0xcd   :  { %v676_v35 = vmul.f32 %v1209_v1, %v667_v30  ;;  %v519_v37 = vrot.slane %v357_v34, 1  ;;  %v632_v51 = vrot.slane %v453_v32, 3  ;;  %v767_v5 = vunpack.c.l.b16 %v731_v60 }
  0xcf   :  { %v689_v40 = vrot.slane %v676_v35, 4  ;;  %v520_v42 = vsel %vm511_vm0, %v518_v36, %v519_v37 }
  0xd0   :  { %v546_v43 = vadd.f32 %v520_v42, %v489_v33  ;;  %v314_v45 = vpop.f32.mrf.mxu0 }
  0xd1   :  { %v690_v44 = vmax.f32 %v676_v35, %v689_v40 }
  0xd3   :  { %v691_v47 = vrot.slane %v690_v44, 2  ;;  %v406_v48 = vpop.f32.mrf.mxu2 }
  0xd4   :  { %v455_v49 = vpop.f32.mrf.mxu3  ;;  %v576_v52 = vrot.slane %v406_v48, 2  ;;  %v360_v54 = vpop.f32.mrf.mxu1 }
  0xd5   :  { %v633_v53 = vrot.slane %v455_v49, 3  ;;  %v692_v55 = vmax.f32 %v690_v44, %v691_v47  ;;  %v521_v10 = vrot.slane %v360_v54, 1  ;;  %v1092_v54 = vld [vmem:[%s1284_s4 + $0x10] sm:$0xff] }
  0xd6   :  { %v577_v56 = vsel %vm568_vm1, %v575_v50, %v576_v52  ;;  %844 = vmatpush.bf16.msrb.mxu0 %v1092_v54 }
  0xd7   :  { %v634_v57 = vsel %vm625_vm2, %v632_v51, %v633_v53  ;;  %v693_v58 = vrot.slane %v692_v55, 1  ;;  %v603_v59 = vadd.f32 %v577_v56, %v546_v43 }
  0xd8   :  { %v316_v63 = vpop.f32.mrf.mxu0 }
  0xd9   :  { %v694_v61 = vmax.f32 %v692_v55, %v693_v58  ;;  %v660_v62 = vadd.f32 %v634_v57, %v603_v59  ;;  %v490_v6 = vadd.f32 %v1197_v41, %v316_v63 }
  0xdb   :  { %v732_v0 = vpack.c.bf16 %v694_v61, %v694_v61  ;;  %v668_v2 = vmax.f32 %v660_v62, 0.0  ;;  %v409_v3 = vpop.f32.mrf.mxu2 }
  0xdc   :  { %v458_v4 = vpop.f32.mrf.mxu3  ;;  %v362_v7 = vpop.f32.mrf.mxu1  ;;  %v578_v22 = vrot.slane %v409_v3, 2 }
  0xdd   :  { %v768_v8 = vunpack.c.l.b16 %v732_v0  ;;  %v677_v9 = vmul.f32 %v1209_v1, %v668_v2  ;;  %v522_v11 = vrot.slane %v362_v7, 1  ;;  %v635_v27 = vrot.slane %v458_v4, 3 }
  0xdf   :  { %v695_v13 = vrot.slane %v677_v9, 4  ;;  %v523_v14 = vsel %vm511_vm0, %v521_v10, %v522_v11  ;;  %v776_v15 = vsel %vm775_vm3, %v768_v8, %v767_v5  ;;  %v1091_v8 = vld [vmem:[%s1284_s4 + $0x8] sm:$0xff] }
  0xe0   :  { %v547_v16 = vadd.f32 %v523_v14, %v490_v6  ;;  %v318_v18 = vpop.f32.mrf.mxu0  ;;  %845 = vmatpush.bf16.msrb.mxu0 %v1091_v8 }
  0xe1   :  { %v696_v17 = vmax.f32 %v677_v9, %v695_v13 }
  0xe3   :  { %v697_v19 = vrot.slane %v696_v17, 2  ;;  %v411_v20 = vpop.f32.mrf.mxu2 }
  0xe4   :  { %v460_v21 = vpop.f32.mrf.mxu3  ;;  %v579_v23 = vrot.slane %v411_v20, 2  ;;  %v365_v25 = vpop.f32.mrf.mxu1 }
  0xe5   :  { %v636_v24 = vrot.slane %v460_v21, 3  ;;  %v698_v26 = vmax.f32 %v696_v17, %v697_v19  ;;  %v524_v6 = vrot.slane %v365_v25, 1 }
  0xe6   :  { %v580_v28 = vsel %vm568_vm1, %v578_v22, %v579_v23 }
  0xe7   :  { %v699_v29 = vrot.slane %v698_v26, 1  ;;  %v604_v30 = vadd.f32 %v580_v28, %v547_v16  ;;  %v637_v31 = vsel %vm625_vm2, %v635_v27, %v636_v24 }
  0xe8   :  { %v320_v34 = vpop.f32.mrf.mxu0 }
  0xe9   :  { %v700_v32 = vmax.f32 %v698_v26, %v699_v29  ;;  %v661_v33 = vadd.f32 %v637_v31, %v604_v30  ;;  %v491_v9 = vadd.f32 %v1197_v41, %v320_v34 }
  0xeb   :  { %v733_v35 = vpack.c.bf16 %v700_v32, %v700_v32  ;;  %v669_v36 = vmax.f32 %v661_v33, 0.0  ;;  %v414_v37 = vpop.f32.mrf.mxu2 }
  0xec   :  { %v1235_v38 = vpop.f32.mrf.mxu3  ;;  %v367_v40 = vpop.f32.mrf.mxu1  ;;  %v581_v12 = vrot.slane %v414_v37, 2 }
  0xed   :  { %v769_v42 = vunpack.c.l.b16 %v733_v35  ;;  %v678_v43 = vmul.f32 %v1209_v1, %v669_v36  ;;  %v525_v0 = vrot.slane %v367_v40, 1  ;;  %v638_v28 = vrot.slane %v1235_v38, 3  ;;  %v1090_v38 = vld [vmem:[%s1284_s4] sm:$0xff] }
  0xee   :  { %846 = vmatpush.bf16.msrb.mxu0 %v1090_v38 }
  0xef   :  { %v701_v44 = vrot.slane %v678_v43, 4  ;;  %v778_v45 = vsel %vm777_vm4, %v769_v42, %v776_v15  ;;  %v526_v13 = vsel %vm511_vm0, %v524_v6, %v525_v0 }
  0xf0   :  { %v322_v47 = vpop.f32.mrf.mxu0  ;;  %v548_v19 = vadd.f32 %v526_v13, %v491_v9 }
  0xf1   :  { %v702_v46 = vmax.f32 %v678_v43, %v701_v44 }
  0xf3   :  { %v703_v48 = vrot.slane %v702_v46, 2  ;;  %v416_v49 = vpop.f32.mrf.mxu2 }
  0xf4   :  { %v465_v50 = vpop.f32.mrf.mxu3  ;;  %v370_v51 = vpop.f32.mrf.mxu1  ;;  %v582_v7 = vrot.slane %v416_v49, 2 }
  0xf5   :  { %v704_v52 = vmax.f32 %v702_v46, %v703_v48  ;;  %v527_v10 = vrot.slane %v370_v51, 1  ;;  %v639_v21 = vrot.slane %v465_v50, 3 }
  0xf6   :  { %v583_v17 = vsel %vm568_vm1, %v581_v12, %v582_v7 }
  0xf7   :  { %v705_v53 = vrot.slane %v704_v52, 1  ;;  %v605_v25 = vadd.f32 %v583_v17, %v548_v19  ;;  %v640_v32 = vsel %vm625_vm2, %v638_v28, %v639_v21 }
  0xf8   :  { %v324_v56 = vpop.f32.mrf.mxu0 }
  0xf9   :  { %v706_v55 = vmax.f32 %v704_v52, %v705_v53  ;;  %v492_v14 = vadd.f32 %v1197_v41, %v324_v56  ;;  %v662_v33 = vadd.f32 %v640_v32, %v605_v25 }
  0xfb   :  { %v734_v57 = vpack.c.bf16 %v706_v55, %v706_v55  ;;  %v419_v58 = vpop.f32.mrf.mxu2  ;;  %v670_v44 = vmax.f32 %v662_v33, 0.0 }
  0xfc   :  { %v468_v59 = vpop.f32.mrf.mxu3  ;;  %v372_v60 = vpop.f32.mrf.mxu1  ;;  %v584_v15 = vrot.slane %v419_v58, 2 }
  0xfd   :  { %v770_v61 = vunpack.c.l.b16 %v734_v57  ;;  %v528_v4 = vrot.slane %v372_v60, 1  ;;  %v641_v30 = vrot.slane %v468_v59, 3  ;;  %v679_v54 = vmul.f32 %v1209_v1, %v670_v44 }
  0xff   :  { %v1244_v62 = vsel %vm779_vm5, %v770_v61, %v778_v45  ;;  %v529_v16 = vsel %vm511_vm0, %v527_v10, %v528_v4 }
 0x100   :  { %v326_v63 = vpop.f32.mrf.mxu0  ;;  %v549_v22 = vadd.f32 %v529_v16, %v492_v14 }
 0x101   :  { %v707_v63 = vrot.slane %v679_v54, 4 }
 0x103   :  { %v421_v2 = vpop.f32.mrf.mxu2  ;;  %v708_v6 = vmax.f32 %v679_v54, %v707_v63 }
 0x104   :  { %v470_v3 = vpop.f32.mrf.mxu3  ;;  %v375_v5 = vpop.f32.mrf.mxu1  ;;  %v585_v11 = vrot.slane %v421_v2, 2 }
 0x105   :  { %v642_v26 = vrot.slane %v470_v3, 3  ;;  %v530_v35 = vrot.slane %v375_v5, 1 }
 0x106   :  { %v586_v20 = vsel %vm568_vm1, %v584_v15, %v585_v11  ;;  %v709_v15 = vrot.slane %v708_v6, 2 }
 0x107   :  { %v606_v29 = vadd.f32 %v586_v20, %v549_v22  ;;  %v643_v34 = vsel %vm625_vm2, %v641_v30, %v642_v26 }
 0x108   :  { %v328_v18 = vpop.f32.mrf.mxu0  ;;  %v710_v25 = vmax.f32 %v708_v6, %v709_v15 }
 0x109   :  { %v663_v36 = vadd.f32 %v643_v34, %v606_v29  ;;  %v493_v37 = vadd.f32 %v1197_v41, %v328_v18 }
 0x10a   :  { %v711_v30 = vrot.slane %v710_v25, 1 }
 0x10b   :  { %v424_v23 = vpop.f32.mrf.mxu2  ;;  %v671_v49 = vmax.f32 %v663_v36, 0.0 }
 0x10c   :  { %v473_v24 = vpop.f32.mrf.mxu3  ;;  %v377_v27 = vpop.f32.mrf.mxu1  ;;  %v587_v45 = vrot.slane %v424_v23, 2 }
 0x10d   :  { %v531_v31 = vrot.slane %v377_v27, 1  ;;  %v644_v51 = vrot.slane %v473_v24, 3  ;;  %v680_v56 = vmul.f32 %v1209_v1, %v671_v49 }
 0x10f   :  { %v532_v40 = vsel %vm511_vm0, %v530_v35, %v531_v31  ;;  %v713_v2 = vrot.slane %v680_v56, 4  ;;  %v712_v35 = vmax.f32 %v710_v25, %v711_v30 }
 0x110   :  { %v330_v39 = vpop.f32.mrf.mxu0  ;;  %v550_v50 = vadd.f32 %v532_v40, %v493_v37 }
 0x111   :  { %v714_v8 = vmax.f32 %v680_v56, %v713_v2  ;;  %v1102_v56 = vld [vmem:[%s1285_s5] ss:$0 sm:$0xff] }
 0x113   :  { %v426_v42 = vpop.f32.mrf.mxu2  ;;  %v715_v19 = vrot.slane %v714_v8, 2 }
 0x114   :  { %v475_v43 = vpop.f32.mrf.mxu3  ;;  %v588_v46 = vrot.slane %v426_v42, 2  ;;  %v380_v48 = vpop.f32.mrf.mxu1  ;;  %v735_v42 = vpack.c.bf16 %v712_v35, %v712_v35 }
 0x115   :  { %v645_v47 = vrot.slane %v475_v43, 3  ;;  %v533_v7 = vrot.slane %v380_v48, 1  ;;  %v716_v26 = vmax.f32 %v714_v8, %v715_v19 }
 0x116   :  { %v589_v52 = vsel %vm568_vm1, %v587_v45, %v588_v46  ;;  %v771_v46 = vunpack.c.l.b16 %v735_v42 }
 0x117   :  { %v607_v53 = vadd.f32 %v589_v52, %v550_v50  ;;  %v646_v55 = vsel %vm625_vm2, %v644_v51, %v645_v47  ;;  %v717_v31 = vrot.slane %v716_v26, 1 }
 0x118   :  { %v332_v58 = vpop.f32.mrf.mxu0 }
 0x119   :  { %v664_v57 = vadd.f32 %v646_v55, %v607_v53  ;;  %v494_v9 = vadd.f32 %v1197_v41, %v332_v58  ;;  %v718_v37 = vmax.f32 %v716_v26, %v717_v31 }
 0x11b   :  { %v672_v59 = vmax.f32 %v664_v57, 0.0  ;;  %v429_v60 = vpop.f32.mrf.mxu2  ;;  %v736_v38 = vpack.c.bf16 %v718_v37, %v718_v37 }
 0x11c   :  { %v478_v61 = vpop.f32.mrf.mxu3  ;;  %v382_v0 = vpop.f32.mrf.mxu1  ;;  %v590_v16 = vrot.slane %v429_v60, 2 }
 0x11d   :  { %v681_v3 = vmul.f32 %v1209_v1, %v672_v59  ;;  %v534_v4 = vrot.slane %v382_v0, 1  ;;  %v647_v22 = vrot.slane %v478_v61, 3  ;;  %v772_v48 = vunpack.c.l.b16 %v736_v38 }
 0x11f   :  { %v719_v5 = vrot.slane %v681_v3, 4  ;;  %v535_v12 = vsel %vm511_vm0, %v533_v7, %v534_v4 }
 0x120   :  { %v334_v10 = vpop.f32.mrf.mxu0  ;;  %v551_v20 = vadd.f32 %v535_v12, %v494_v9 }
 0x121   :  { %v720_v11 = vmax.f32 %v681_v3, %v719_v5 }
 0x123   :  { %v431_v13 = vpop.f32.mrf.mxu2  ;;  %v721_v21 = vrot.slane %v720_v11, 2 }
 0x124   :  { %v480_v14 = vpop.f32.mrf.mxu3  ;;  %v591_v17 = vrot.slane %v431_v13, 2 }
 0x125   :  { %v648_v18 = vrot.slane %v480_v14, 3  ;;  %v722_v28 = vmax.f32 %v720_v11, %v721_v21 }
 0x126   :  { %v592_v23 = vsel %vm568_vm1, %v590_v16, %v591_v17 }
 0x127   :  { %v608_v24 = vadd.f32 %v592_v23, %v551_v20  ;;  %v649_v41 = vsel %vm625_vm2, %v647_v22, %v648_v18  ;;  %v723_v33 = vrot.slane %v722_v28, 1 }
 0x129   :  { %v665_v27 = vadd.f32 %v649_v41, %v608_v24  ;;  %v724_v39 = vmax.f32 %v722_v28, %v723_v33 }
 0x12b   :  { %v673_v29 = vmax.f32 %v665_v27, 0.0  ;;  %v737_v44 = vpack.c.bf16 %v724_v39, %v724_v39 }
 0x12d   :  { %v682_v32 = vmul.f32 %v1209_v1, %v673_v29  ;;  %v773_v49 = vunpack.c.l.b16 %v737_v44  ;;  %v782_v1 = vsel %vm781_vm6, %v771_v46, %v1244_v62 }
 0x12e   :  { %v784_v52 = vsel %vm783_vm7, %v772_v48, %v782_v1 }
 0x12f   :  { %v725_v34 = vrot.slane %v682_v32, 4  ;;  %v786_v53 = vsel %vm785_vm8, %v773_v49, %v784_v52 }
 0x131   :  { %v726_v36 = vmax.f32 %v682_v32, %v725_v34 }
 0x133   :  { %v727_v40 = vrot.slane %v726_v36, 2 }
 0x135   :  { %v728_v43 = vmax.f32 %v726_v36, %v727_v40 }
 0x137   :  { %v729_v45 = vrot.slane %v728_v43, 1 }
 0x139   :  { %v730_v47 = vmax.f32 %v728_v43, %v729_v45 }
 0x13b   :  { %v738_v50 = vpack.c.bf16 %v730_v47, %v730_v47 }
 0x13d   :  { %v774_v51 = vunpack.c.l.b16 %v738_v50 }
 0x13f   :  { %v788_v54 = vsel %vm787_vm9, %v774_v51, %v786_v53 }
 0x140   :  { %v789_v55 = vpack.c.b16 %v788_v54, %v788_v54 }
 0x142   :  { %847 = vmatmul.bf16.vlgmr.msrb.gmra.mxu0 %v789_v55 }
 0x1bf   :  { %v848_v57 = vpop.f32.mrf.mxu0 }
 0x1c0   :  { %v849_v58 = vadd.f32 %v1102_v56, %v848_v57 }
 0x1c2   :  { %852 = vst [vmem:[%s1286_s6] sm:$0xff] %v849_v58 }
 0x1c7   :  { %v850_v59 = vpop.f32.mrf.mxu0 }
 0x1c8   :  { %857 = vsyncpa [#allocation3], 1 }

</bundles_post_ra>
